<compile_context>
chip_gen: v7x
topology: tpu7x:2x2x1
jax: 0.10.0
libtpu: 0.0.40
codegen_flags: <defaults>
</compile_context>

<pallas_src>
import functools

import jax
import jax.numpy as jnp
from jax.experimental import pallas as pl
from jax.experimental.pallas import tpu as pltpu

N_EMBD = 384
DROPOUT_P = 0.2


def _ffwd_kernel(seed_ref, x_ref, w1_ref, b1_ref, w2_ref, b2_ref, o_ref,
                 *, keep_prob, apply_dropout, h_chunk):
    # x_ref: (tm, C) f32/bf16   w1_ref: (C, H) bf16   b1_ref: (1, H) f32
    # w2_ref: (H, C) bf16       b2_ref: (1, C) f32    o_ref: (tm, C)
    xb = x_ref[...].astype(jnp.bfloat16)            # in-kernel cast (no-op if bf16)
    H = w1_ref.shape[1]
    n_chunks = H // h_chunk

    # H-chunked fused MLP: never materialize the full (tm, H) f32 hidden.
    y = None
    for c in range(n_chunks):
        lo = c * h_chunk
        w1c = w1_ref[:, lo:lo + h_chunk].astype(jnp.bfloat16)
        h = jnp.dot(xb, w1c, preferred_element_type=jnp.float32)   # MXU, f32 acc
        h = jnp.maximum(h + b1_ref[:, lo:lo + h_chunk], 0.0)       # bias+ReLU in f32
        w2c = w2_ref[lo:lo + h_chunk, :].astype(jnp.bfloat16)
        d = jnp.dot(h.astype(jnp.bfloat16), w2c,                   # MXU, f32 acc
                    preferred_element_type=jnp.float32)
        y = d if y is None else y + d
    y = y + b2_ref[...]

    if apply_dropout:
        # Training-mode (inverted) dropout generated on-chip.
        # TODO(synk): hardware-PRNG mask is not bit-identical to torch's RNG
        # stream; per-step reseed with seed + program_id is deterministic per call.
        pltpu.prng_seed(seed_ref[0] + pl.program_id(0))
        bits = pltpu.prng_random_bits(y.shape)                     # uint32 bits
        thresh = jnp.uint32(min(int(keep_prob * 4294967296.0), 4294967295))
        y = jnp.where(bits < thresh, y * (1.0 / keep_prob), 0.0)

    o_ref[...] = y.astype(o_ref.dtype)


def feed_forward(x, w1, b1, w2, b2, *, training=False, seed=0,
                 dropout_p=DROPOUT_P, tm=None, out_dtype=None):
    """x: (B, T, C). w1: (C, 4C), w2: (4C, C) — store them in bf16 for best perf.

    Returns (B, T, C) in out_dtype (defaults to x.dtype)."""
    B, T, C = x.shape
    H = w1.shape[1]                                  # 4 * C
    M = B * T
    if out_dtype is None:
        out_dtype = x.dtype

    # Row tile: 1024 amortizes per-step pipeline overhead on v6e and stays well
    # inside v5e/v7x VMEM budgets with H-chunking; clamp to M for small inputs.
    if tm is None:
        tm = 1024
    tm = min(tm, M)
    if tm != M and tm % 8 != 0:                      # (8, 128) block constraint
        tm = max(8, (tm // 8) * 8)
    grid_m = pl.cdiv(M, tm)                          # ragged last block is masked

    # Hidden-dim chunk: multiple of 256 (MXU width) when possible.
    h_chunk = 512 if H % 512 == 0 else (256 if H % 256 == 0 else H)

    x2 = x.reshape(M, C)                             # no pad, no dtype cast here
    b1_2d = b1.reshape(1, H).astype(jnp.float32)
    b2_2d = b2.reshape(1, C).astype(jnp.float32)
    seed_arr = jnp.array([seed], dtype=jnp.int32)

    kernel = functools.partial(
        _ffwd_kernel,
        keep_prob=1.0 - dropout_p,
        apply_dropout=bool(training and dropout_p > 0.0),
        h_chunk=h_chunk,
    )

    flops = 4 * M * C * H                            # two matmuls, 2*M*K*N each
    bytes_accessed = (x2.size * x2.dtype.itemsize
                      + w1.size * w1.dtype.itemsize
                      + w2.size * w2.dtype.itemsize
                      + b1_2d.size * 4 + b2_2d.size * 4
                      + M * C * jnp.dtype(out_dtype).itemsize)

    out2 = pl.pallas_call(
        kernel,
        out_shape=jax.ShapeDtypeStruct((M, C), out_dtype),
        grid_spec=pltpu.PrefetchScalarGridSpec(
            num_scalar_prefetch=1,
            grid=(grid_m,),
            in_specs=[
                pl.BlockSpec((tm, C), lambda i, seed: (i, 0)),       # x rows
                pl.BlockSpec((C, H), lambda i, seed: (0, 0),         # W1 (resident)
                             pipeline_mode=pl.Buffered(1)),
                pl.BlockSpec((1, H), lambda i, seed: (0, 0),         # b1 (resident)
                             pipeline_mode=pl.Buffered(1)),
                pl.BlockSpec((H, C), lambda i, seed: (0, 0),         # W2 (resident)
                             pipeline_mode=pl.Buffered(1)),
                pl.BlockSpec((1, C), lambda i, seed: (0, 0),         # b2 (resident)
                             pipeline_mode=pl.Buffered(1)),
            ],
            out_specs=pl.BlockSpec((tm, C), lambda i, seed: (i, 0)),
        ),
        compiler_params=pltpu.CompilerParams(
            dimension_semantics=("parallel",),       # shard M across v7x's 2 TCs
            vmem_limit_bytes=48 * 1024 * 1024,       # headroom for tm up to 2048
        ),
        cost_estimate=pl.CostEstimate(
            flops=flops, transcendentals=0, bytes_accessed=bytes_accessed),
    )(seed_arr, x2, w1, b1_2d, w2, b2_2d)

    return out2.reshape(B, T, C)


def init_params(key, n_embd):
    """Deterministic init matching torch.nn.Linear's U(-1/sqrt(fan_in), 1/sqrt(fan_in))."""
    k1, k2, k3, k4 = jax.random.split(key, 4)
    hid = 4 * n_embd
    bound1 = 1.0 / (n_embd ** 0.5)
    bound2 = 1.0 / (hid ** 0.5)
    w1 = jax.random.uniform(k1, (n_embd, hid), jnp.float32, -bound1, bound1)
    b1 = jax.random.uniform(k2, (hid,), jnp.float32, -bound1, bound1)
    w2 = jax.random.uniform(k3, (hid, n_embd), jnp.float32, -bound2, bound2)
    b2 = jax.random.uniform(k4, (n_embd,), jnp.float32, -bound2, bound2)
    return w1, b1, w2, b2


if __name__ == "__main__":
    key = jax.random.PRNGKey(0)
    kx, kp = jax.random.split(key)

    B, T, C = 2, 8, N_EMBD
    x = jax.random.normal(kx, (B, T, C), dtype=jnp.float32)
    w1, b1, w2, b2 = init_params(kp, C)

    # Weights stored once in bf16 (MXU input dtype); biases stay f32.
    w1b = w1.astype(jnp.bfloat16)
    w2b = w2.astype(jnp.bfloat16)

    # Eval-mode forward (dropout is identity).
    out = feed_forward(x, w1b, b1, w2b, b2, training=False)
    out = jax.block_until_ready(out)

    # Reference using the same bf16-input / f32-accumulate matmul recipe.
    x2 = x.reshape(-1, C).astype(jnp.bfloat16)
    h = jnp.dot(x2, w1b, preferred_element_type=jnp.float32) + b1
    h = jnp.maximum(h, 0.0)
    ref = jnp.dot(h.astype(jnp.bfloat16), w2b,
                  preferred_element_type=jnp.float32) + b2
    ref = ref.reshape(B, T, C)
    assert out.shape == (B, T, C)
    assert jnp.allclose(out, ref, atol=2e-2, rtol=2e-2), "mismatch vs reference"

    print("KERNEL_OK")
</pallas_src>

<mosaic_0001>
module attributes {stable_mosaic.version = 11 : i64} {
  func.func @_ffwd_kernel(%arg0: i32, %arg1: memref<1xi32, #tpu.memory_space<smem>>, %arg2: memref<16x384xf32, #tpu.memory_space<vmem>>, %arg3: memref<384x1536xbf16, #tpu.memory_space<vmem>>, %arg4: memref<1x1536xf32, #tpu.memory_space<vmem>>, %arg5: memref<1536x384xbf16, #tpu.memory_space<vmem>>, %arg6: memref<1x384xf32, #tpu.memory_space<vmem>>, %arg7: memref<16x384xf32, #tpu.memory_space<vmem>>) attributes {dimension_semantics = [#tpu.dimension_semantics<parallel>], iteration_bounds = array<i64: 1>, scalar_prefetch = 1 : i64, scratch_operands = 0 : i64, tpu.core_type = #tpu.core_type<tc>, window_params = [{transform_indices = @transform_0, window_bounds = array<i64: 16, 384>}, {pipeline_mode = #tpu.pipeline_mode<synchronous>, transform_indices = @transform_1, window_bounds = array<i64: 384, 1536>}, {pipeline_mode = #tpu.pipeline_mode<synchronous>, transform_indices = @transform_2, window_bounds = array<i64: 1, 1536>}, {pipeline_mode = #tpu.pipeline_mode<synchronous>, transform_indices = @transform_3, window_bounds = array<i64: 1536, 384>}, {pipeline_mode = #tpu.pipeline_mode<synchronous>, transform_indices = @transform_4, window_bounds = array<i64: 1, 384>}, {transform_indices = @transform_5, window_bounds = array<i64: 16, 384>}]} {
    %c0 = arith.constant 0 : index
    %c0_0 = arith.constant 0 : index
    %0 = vector.load %arg2[%c0, %c0_0] : memref<16x384xf32, #tpu.memory_space<vmem>>, vector<16x384xf32>
    %1 = arith.truncf %0 : vector<16x384xf32> to vector<16x384xbf16>
    %c0_1 = arith.constant 0 : index
    %c0_2 = arith.constant 0 : index
    %2 = vector.load %arg3[%c0_1, %c0_2] : memref<384x1536xbf16, #tpu.memory_space<vmem>>, vector<384x512xbf16>
    %cst = arith.constant dense<0.000000e+00> : vector<16x512xf32>
    %3 = tpu.matmul %1, %2, %cst {dimension_numbers = #tpu.dot_dimension_numbers<[1], [0], [0], [1], [0, 0, 1, 1], [], []>} : vector<16x384xbf16>, vector<384x512xbf16>, vector<16x512xf32> -> vector<16x512xf32>
    %c0_3 = arith.constant 0 : index
    %c0_4 = arith.constant 0 : index
    %4 = vector.load %arg4[%c0_3, %c0_4] : memref<1x1536xf32, #tpu.memory_space<vmem>>, vector<1x512xf32>
    %5 = vector.broadcast %4 : vector<1x512xf32> to vector<16x512xf32>
    %6 = arith.addf %3, %5 : vector<16x512xf32>
    %cst_5 = arith.constant 0.000000e+00 : f32
    %7 = vector.broadcast %cst_5 : f32 to vector<16x512xf32>
    %8 = arith.maximumf %6, %7 : vector<16x512xf32>
    %c0_6 = arith.constant 0 : index
    %c0_7 = arith.constant 0 : index
    %9 = vector.load %arg5[%c0_6, %c0_7] : memref<1536x384xbf16, #tpu.memory_space<vmem>>, vector<512x384xbf16>
    %10 = arith.truncf %8 : vector<16x512xf32> to vector<16x512xbf16>
    %cst_8 = arith.constant dense<0.000000e+00> : vector<16x384xf32>
    %11 = tpu.matmul %10, %9, %cst_8 {dimension_numbers = #tpu.dot_dimension_numbers<[1], [0], [0], [1], [0, 0, 1, 1], [], []>} : vector<16x512xbf16>, vector<512x384xbf16>, vector<16x384xf32> -> vector<16x384xf32>
    %c0_9 = arith.constant 0 : index
    %c512 = arith.constant 512 : index
    %12 = vector.load %arg3[%c0_9, %c512] : memref<384x1536xbf16, #tpu.memory_space<vmem>>, vector<384x512xbf16>
    %cst_10 = arith.constant dense<0.000000e+00> : vector<16x512xf32>
    %13 = tpu.matmul %1, %12, %cst_10 {dimension_numbers = #tpu.dot_dimension_numbers<[1], [0], [0], [1], [0, 0, 1, 1], [], []>} : vector<16x384xbf16>, vector<384x512xbf16>, vector<16x512xf32> -> vector<16x512xf32>
    %c0_11 = arith.constant 0 : index
    %c512_12 = arith.constant 512 : index
    %14 = vector.load %arg4[%c0_11, %c512_12] : memref<1x1536xf32, #tpu.memory_space<vmem>>, vector<1x512xf32>
    %15 = vector.broadcast %14 : vector<1x512xf32> to vector<16x512xf32>
    %16 = arith.addf %13, %15 : vector<16x512xf32>
    %cst_13 = arith.constant 0.000000e+00 : f32
    %17 = vector.broadcast %cst_13 : f32 to vector<16x512xf32>
    %18 = arith.maximumf %16, %17 : vector<16x512xf32>
    %c512_14 = arith.constant 512 : index
    %c0_15 = arith.constant 0 : index
    %19 = vector.load %arg5[%c512_14, %c0_15] : memref<1536x384xbf16, #tpu.memory_space<vmem>>, vector<512x384xbf16>
    %20 = arith.truncf %18 : vector<16x512xf32> to vector<16x512xbf16>
    %cst_16 = arith.constant dense<0.000000e+00> : vector<16x384xf32>
    %21 = tpu.matmul %20, %19, %cst_16 {dimension_numbers = #tpu.dot_dimension_numbers<[1], [0], [0], [1], [0, 0, 1, 1], [], []>} : vector<16x512xbf16>, vector<512x384xbf16>, vector<16x384xf32> -> vector<16x384xf32>
    %22 = arith.addf %11, %21 : vector<16x384xf32>
    %c0_17 = arith.constant 0 : index
    %c1024 = arith.constant 1024 : index
    %23 = vector.load %arg3[%c0_17, %c1024] : memref<384x1536xbf16, #tpu.memory_space<vmem>>, vector<384x512xbf16>
    %cst_18 = arith.constant dense<0.000000e+00> : vector<16x512xf32>
    %24 = tpu.matmul %1, %23, %cst_18 {dimension_numbers = #tpu.dot_dimension_numbers<[1], [0], [0], [1], [0, 0, 1, 1], [], []>} : vector<16x384xbf16>, vector<384x512xbf16>, vector<16x512xf32> -> vector<16x512xf32>
    %c0_19 = arith.constant 0 : index
    %c1024_20 = arith.constant 1024 : index
    %25 = vector.load %arg4[%c0_19, %c1024_20] : memref<1x1536xf32, #tpu.memory_space<vmem>>, vector<1x512xf32>
    %26 = vector.broadcast %25 : vector<1x512xf32> to vector<16x512xf32>
    %27 = arith.addf %24, %26 : vector<16x512xf32>
    %cst_21 = arith.constant 0.000000e+00 : f32
    %28 = vector.broadcast %cst_21 : f32 to vector<16x512xf32>
    %29 = arith.maximumf %27, %28 : vector<16x512xf32>
    %c1024_22 = arith.constant 1024 : index
    %c0_23 = arith.constant 0 : index
    %30 = vector.load %arg5[%c1024_22, %c0_23] : memref<1536x384xbf16, #tpu.memory_space<vmem>>, vector<512x384xbf16>
    %31 = arith.truncf %29 : vector<16x512xf32> to vector<16x512xbf16>
    %cst_24 = arith.constant dense<0.000000e+00> : vector<16x384xf32>
    %32 = tpu.matmul %31, %30, %cst_24 {dimension_numbers = #tpu.dot_dimension_numbers<[1], [0], [0], [1], [0, 0, 1, 1], [], []>} : vector<16x512xbf16>, vector<512x384xbf16>, vector<16x384xf32> -> vector<16x384xf32>
    %33 = arith.addf %22, %32 : vector<16x384xf32>
    %c0_25 = arith.constant 0 : index
    %c0_26 = arith.constant 0 : index
    %34 = vector.load %arg6[%c0_25, %c0_26] : memref<1x384xf32, #tpu.memory_space<vmem>>, vector<1x384xf32>
    %35 = vector.broadcast %34 : vector<1x384xf32> to vector<16x384xf32>
    %36 = arith.addf %33, %35 : vector<16x384xf32>
    %c0_27 = arith.constant 0 : index
    %c0_28 = arith.constant 0 : index
    %37 = vector.load %arg7[%c0_27, %c0_28] : memref<16x384xf32, #tpu.memory_space<vmem>>, vector<16x384xf32>
    tpu.vector_store %arg7[%c0_27, %c0_28], %36 {strides = array<i32>} : memref<16x384xf32, #tpu.memory_space<vmem>>, vector<16x384xf32>,
    return
  }
  func.func @transform_0(%arg0: i32, %arg1: memref<1xi32, #tpu.memory_space<smem>>) -> (i32, i32) {
    %c0_i32 = arith.constant 0 : i32
    %c0_i32_0 = arith.constant 0 : i32
    return %arg0, %c0_i32 : i32, i32
  }
  func.func @transform_1(%arg0: i32, %arg1: memref<1xi32, #tpu.memory_space<smem>>) -> (i32, i32) {
    %c0_i32 = arith.constant 0 : i32
    %c0_i32_0 = arith.constant 0 : i32
    %c0_i32_1 = arith.constant 0 : i32
    return %c0_i32, %c0_i32_0 : i32, i32
  }
  func.func @transform_2(%arg0: i32, %arg1: memref<1xi32, #tpu.memory_space<smem>>) -> (i32, i32) {
    %c0_i32 = arith.constant 0 : i32
    %c0_i32_0 = arith.constant 0 : i32
    %c0_i32_1 = arith.constant 0 : i32
    return %c0_i32, %c0_i32_0 : i32, i32
  }
  func.func @transform_3(%arg0: i32, %arg1: memref<1xi32, #tpu.memory_space<smem>>) -> (i32, i32) {
    %c0_i32 = arith.constant 0 : i32
    %c0_i32_0 = arith.constant 0 : i32
    %c0_i32_1 = arith.constant 0 : i32
    return %c0_i32, %c0_i32_0 : i32, i32
  }
  func.func @transform_4(%arg0: i32, %arg1: memref<1xi32, #tpu.memory_space<smem>>) -> (i32, i32) {
    %c0_i32 = arith.constant 0 : i32
    %c0_i32_0 = arith.constant 0 : i32
    %c0_i32_1 = arith.constant 0 : i32
    return %c0_i32, %c0_i32_0 : i32, i32
  }
  func.func @transform_5(%arg0: i32, %arg1: memref<1xi32, #tpu.memory_space<smem>>) -> (i32, i32) {
    %c0_i32 = arith.constant 0 : i32
    %c0_i32_0 = arith.constant 0 : i32
    return %arg0, %c0_i32 : i32, i32
  }
}

</mosaic_0001>

<bundles_post_ra>
// kernel: tpu_custom_call.1
= control target key start
LH: loop header
LB: loop body
LE: loop exit
PB: predicated region body
PF: predicated region fallthrough
CT: control target
= control target key end

     0   :  { %12 = vsyncpa [#allocation5], 0  ;;  %s6883_s0 = inlined_call_operand.<no memory space> [shape: s32[1], index: 0, kind: input, shape index: {}]   ;;  %s6884_s1 = inlined_call_operand.hbm [shape: f32[16,384], index: 1, kind: input, shape index: {}]   ;;  %s6885_s2 = inlined_call_operand.hbm [shape: bf16[384,1536], index: 2, kind: input, shape index: {}]   ;;  %s6886_s3 = inlined_call_operand.hbm [shape: f32[1,1536], index: 3, kind: input, shape index: {}]   ;;  %s6887_s4 = inlined_call_operand.hbm [shape: bf16[1536,384], index: 4, kind: input, shape index: {}]   ;;  %s6888_s5 = inlined_call_operand.hbm [shape: f32[1,384], index: 5, kind: input, shape index: {}]   ;;  %s6889_s6 = inlined_call_operand.hbm [shape: f32[16,384], index: 6, kind: output, shape index: {}]  }
   0x1   :  { %13 = vsyncpa [#allocation8], 0 }
   0x2   :  { %14 = vsyncpa [#allocation11], 0 }
   0x3   :  { %15 = vsyncpa [#allocation6], 0  ;;  %s6666_s0 = smov [#allocation7]   ;;  %s6526_s24 = scalar_lea.hbm %s6885_s2, 36864 }
   0x4   :  { %s33_s21 = sshll.u32 %s6666_s0, 4  ;;  %p6527_p0 = scmp.ne.s32.totalorder %s6885_s2, %s6526_s24  ;;  %s34_s21 = int_to_ptr.vmem [resolvable:$true] %s33_s21 }
   0x5   :  { %p6530_p1 = scmp.lt.u32.totalorder %s6526_s24, %s6885_s2 }
   0x7   :  { %p6532_p2 = pnand %p6530_p1, %p6527_p0 }
   0x9   :  { %6535 = shalt.err (!%p6532_p2)
}
   0xa   :  { %s6536_s29 = scalar_lea.vmem %s34_s21, 36864  ;;  %p6541_p4 = scmp.lt.s32.totalorder %s34_s21, %s34_s21 }
   0xb   :  { %p6537_p3 = scmp.ne.s32.totalorder %s34_s21, %s6536_s29  ;;  %p6542_p5 = scmp.lt.s32.totalorder %s6536_s29, %s6536_s29 }
   0xd   :  { %p6543_p6 = por %p6542_p5, %p6541_p4 }
   0xf   :  { %p6544_p7 = pnand %p6543_p6, %p6537_p3 }
  0x11   :  { %6547 = shalt.err (!%p6544_p7)
}
  0x12   :  { %s6667_s30 = smov 768   ;;  %s6668_s7 = smov 48  }
  0x13   :  { %39 = dma.hbm_to_vmem [thread:$0]  %s6885_s2, 36864, %s34_s21, [#allocation8], %s6667_s30, %s6667_s30, %s6668_s7  }
  0x14   :  { %s6669_s10 = smov [#allocation10]   ;;  %s6548_s14 = scalar_lea.hbm %s6887_s4, 36864 }
  0x15   :  { %s55_s11 = sshll.u32 %s6669_s10, 4  ;;  %p6549_p8 = scmp.ne.s32.totalorder %s6887_s4, %s6548_s14  ;;  %s56_s11 = int_to_ptr.vmem [resolvable:$true] %s55_s11 }
  0x16   :  { %p6552_p9 = scmp.lt.u32.totalorder %s6548_s14, %s6887_s4 }
  0x18   :  { %p6554_p10 = pnand %p6552_p9, %p6549_p8 }
  0x1a   :  { %6557 = shalt.err (!%p6554_p10)
}
  0x1b   :  { %s6558_s19 = scalar_lea.vmem %s56_s11, 36864  ;;  %p6563_p12 = scmp.lt.s32.totalorder %s56_s11, %s56_s11 }
  0x1c   :  { %p6559_p11 = scmp.ne.s32.totalorder %s56_s11, %s6558_s19  ;;  %p6564_p13 = scmp.lt.s32.totalorder %s6558_s19, %s6558_s19 }
  0x1e   :  { %p6565_p0 = por %p6564_p13, %p6563_p12 }
  0x20   :  { %p6566_p1 = pnand %p6565_p0, %p6559_p11 }
  0x22   :  { %6569 = shalt.err (!%p6566_p1)
}
  0x23   :  { %s6670_s2 = smov 192   ;;  %s6671_s20 = smov 12  }
  0x24   :  { %61 = dma.hbm_to_vmem [thread:$0]  %s6887_s4, 36864, %s56_s11, [#allocation11], %s6670_s2, %s6670_s2, %s6671_s20  }
  0x25   :  { %s6672_s22 = smov [#allocation4]   ;;  %s6570_s26 = scalar_lea.hbm %s6884_s1, 768 }
  0x26   :  { %s21_s23 = sshll.u32 %s6672_s22, 4  ;;  %p6571_p2 = scmp.ne.s32.totalorder %s6884_s1, %s6570_s26  ;;  %s22_s23 = int_to_ptr.vmem [resolvable:$true] %s21_s23 }
  0x27   :  { %p6574_p3 = scmp.lt.u32.totalorder %s6570_s26, %s6884_s1 }
  0x29   :  { %p6576_p4 = pnand %p6574_p3, %p6571_p2 }
  0x2b   :  { %6579 = shalt.err (!%p6576_p4)
}
  0x2c   :  { %s6580_s7 = scalar_lea.vmem %s22_s23, 768  ;;  %p6585_p6 = scmp.lt.s32.totalorder %s22_s23, %s22_s23 }
  0x2d   :  { %p6581_p5 = scmp.ne.s32.totalorder %s22_s23, %s6580_s7  ;;  %p6586_p7 = scmp.lt.s32.totalorder %s6580_s7, %s6580_s7 }
  0x2f   :  { %p6587_p8 = por %p6586_p7, %p6585_p6 }
  0x31   :  { %p6588_p9 = pnand %p6587_p8, %p6581_p5 }
  0x33   :  { %6591 = shalt.err (!%p6588_p9)
}
  0x34   :  { %s6673_s4 = smov 384   ;;  %s6674_s8 = smov 24  }
  0x35   :  { %27 = dma.hbm_to_vmem [thread:$0]  %s6884_s1, 768, %s22_s23, [#allocation5], %s6673_s4, %s6673_s4, %s6674_s8  }
  0x36   :  { %s6675_s11 = smov [#allocation9]   ;;  %s6676_s13 = smov [#allocation12]  }
  0x37   :  { %s46_s12 = sshll.u32 %s6675_s11, 4  ;;  %s68_s14 = sshll.u32 %s6676_s13, 4  ;;  %s47_s12 = int_to_ptr.vmem [resolvable:$true] %s46_s12  ;;  %s69_s14 = int_to_ptr.vmem [resolvable:$true] %s68_s14 }
  0x38   :  { %s6592_s17 = scalar_lea.hbm %s6886_s3, 192 }
  0x39   :  { %p6593_p10 = scmp.ne.s32.totalorder %s6886_s3, %s6592_s17  ;;  %p6596_p11 = scmp.lt.u32.totalorder %s6592_s17, %s6886_s3 }
  0x3b   :  { %p6598_p12 = pnand %p6596_p11, %p6593_p10 }
  0x3d   :  { %6601 = shalt.err (!%p6598_p12)
}
  0x3e   :  { %s6602_s1 = scalar_lea.vmem %s47_s12, 192  ;;  %p6607_p0 = scmp.lt.s32.totalorder %s47_s12, %s47_s12 }
  0x3f   :  { %p6603_p13 = scmp.ne.s32.totalorder %s47_s12, %s6602_s1  ;;  %p6608_p1 = scmp.lt.s32.totalorder %s6602_s1, %s6602_s1 }
  0x41   :  { %p6609_p2 = por %p6608_p1, %p6607_p0 }
  0x43   :  { %p6610_p3 = pnand %p6609_p2, %p6603_p13 }
  0x45   :  { %6613 = shalt.err (!%p6610_p3)
}
  0x46   :  { %49 = dma.hbm_to_vmem [thread:$0]  %s6886_s3, 192, %s47_s12, [#allocation8]  }
  0x47   :  { %s6614_s24 = scalar_lea.hbm %s6888_s5, 48 }
  0x48   :  { %p6615_p4 = scmp.ne.s32.totalorder %s6888_s5, %s6614_s24  ;;  %p6618_p5 = scmp.lt.u32.totalorder %s6614_s24, %s6888_s5 }
  0x4a   :  { %p6620_p6 = pnand %p6618_p5, %p6615_p4 }
  0x4c   :  { %6623 = shalt.err (!%p6620_p6)
}
  0x4d   :  { %s6624_s29 = scalar_lea.vmem %s69_s14, 48  ;;  %s6628_s30 = scalar_lea.vmem %s69_s14, 64 }
  0x4e   :  { %p6625_p7 = scmp.ne.s32.totalorder %s69_s14, %s6624_s29  ;;  %p6629_p8 = scmp.lt.s32.totalorder %s69_s14, %s69_s14 }
  0x4f   :  { %p6630_p9 = scmp.lt.s32.totalorder %s6628_s30, %s6624_s29 }
  0x51   :  { %p6631_p10 = por %p6630_p9, %p6629_p8 }
  0x53   :  { %p6632_p11 = pnand %p6631_p10, %p6625_p7 }
  0x55   :  { %6635 = shalt.err (!%p6632_p11)
}
  0x56   :  { %71 = dma.hbm_to_vmem [thread:$0]  %s6888_s5, 48, %s69_s14, [#allocation11]  }
  0x57   :  { %6658 = dma.done.wait [#allocation5], 768  }
  0x58   :  { %6659 = vsyncadd [#allocation5], 4294966528 }
  0x59   :  { %6660 = dma.done.wait [#allocation8], 37056  }
  0x5a   :  { %6661 = vsyncadd [#allocation8], 4294930240 }
  0x5b   :  { %6662 = dma.done.wait [#allocation11], 36912  }
  0x5c   :  { %6663 = vsyncadd [#allocation11], 4294930384  ;;  %v5710_v0 = vld [vmem:[#allocation7 + $0x4] ss:$48 sps:$4 sm:$0xff]   ;;  %v5712_v1 = vld [vmem:[#allocation7 + $0xc] ss:$48 sps:$4 sm:$0xff]  }
  0x5d   :  { %695 = vmatprep.subr.bf16.mxu0 %v5710_v0  ;;  %v5714_v2 = vld [vmem:[#allocation7] ss:$48 sps:$4 sm:$0xff]   ;;  %v5715_v3 = vld [vmem:[#allocation7 + $0x8] ss:$48 sps:$4 sm:$0xff]   ;;  %781 = vmatprep.subr.bf16.mxu1 %v5712_v1  ;;  %v5716_v4 = vld [vmem:[#allocation7 + $0x64] ss:$48 sps:$4 sm:$0xff]  }
  0x5e   :  { %696 = vmatpush1.bf16.msra.mxu0 %v5714_v2  ;;  %782 = vmatpush1.bf16.msra.mxu1 %v5715_v3  ;;  %v5718_v5 = vld [vmem:[#allocation7 + $0x6c] ss:$48 sps:$4 sm:$0xff]   ;;  %v5720_v6 = vld [vmem:[#allocation7 + $0x60] ss:$48 sps:$4 sm:$0xff]   ;;  %v5721_v7 = vld [vmem:[#allocation7 + $0x68] ss:$48 sps:$4 sm:$0xff]  }
  0x5f   :  { %697 = vmatprep.subr.bf16.mxu0 %v5716_v4  ;;  %783 = vmatprep.subr.bf16.mxu1 %v5718_v5  ;;  %v5722_v8 = vld [vmem:[#allocation7 + $0xc4] ss:$48 sps:$4 sm:$0xff]   ;;  %v5724_v9 = vld [vmem:[#allocation7 + $0xcc] ss:$48 sps:$4 sm:$0xff]   ;;  %v5726_v10 = vld [vmem:[#allocation7 + $0xc0] ss:$48 sps:$4 sm:$0xff]  }
  0x60   :  { %v5727_v11 = vld [vmem:[#allocation7 + $0xc8] ss:$48 sps:$4 sm:$0xff]   ;;  %v5728_v12 = vld [vmem:[#allocation7 + $0x124] ss:$48 sps:$4 sm:$0xff]   ;;  %v5730_v13 = vld [vmem:[#allocation7 + $0x12c] ss:$48 sps:$4 sm:$0xff]  }
  0x61   :  { %v5732_v14 = vld [vmem:[#allocation7 + $0x120] ss:$48 sps:$4 sm:$0xff]   ;;  %v5733_v15 = vld [vmem:[#allocation7 + $0x128] ss:$48 sps:$4 sm:$0xff]   ;;  %v5734_v16 = vld [vmem:[#allocation7 + $0x184] ss:$48 sps:$4 sm:$0xff]  }
  0x62   :  { %698 = vmatpush1.bf16.msra.mxu0 %v5720_v6  ;;  %784 = vmatpush1.bf16.msra.mxu1 %v5721_v7  ;;  %v5736_v17 = vld [vmem:[#allocation7 + $0x18c] ss:$48 sps:$4 sm:$0xff]   ;;  %v5738_v18 = vld [vmem:[#allocation7 + $0x180] ss:$48 sps:$4 sm:$0xff]   ;;  %v5739_v19 = vld [vmem:[#allocation7 + $0x188] ss:$48 sps:$4 sm:$0xff]  }
  0x63   :  { %699 = vmatprep.subr.bf16.mxu0 %v5722_v8  ;;  %785 = vmatprep.subr.bf16.mxu1 %v5724_v9  ;;  %v5740_v20 = vld [vmem:[#allocation7 + $0x1e4] ss:$48 sps:$4 sm:$0xff]   ;;  %v5742_v21 = vld [vmem:[#allocation7 + $0x1ec] ss:$48 sps:$4 sm:$0xff]   ;;  %v5744_v22 = vld [vmem:[#allocation7 + $0x1e0] ss:$48 sps:$4 sm:$0xff]  }
  0x64   :  { %v5745_v23 = vld [vmem:[#allocation7 + $0x1e8] ss:$48 sps:$4 sm:$0xff]   ;;  %v5746_v24 = vld [vmem:[#allocation7 + $0x244] ss:$48 sps:$4 sm:$0xff]   ;;  %v5748_v25 = vld [vmem:[#allocation7 + $0x24c] ss:$48 sps:$4 sm:$0xff]  }
  0x65   :  { %v5750_v26 = vld [vmem:[#allocation7 + $0x240] ss:$48 sps:$4 sm:$0xff]   ;;  %v5751_v27 = vld [vmem:[#allocation7 + $0x248] ss:$48 sps:$4 sm:$0xff]   ;;  %v5752_v28 = vld [vmem:[#allocation7 + $0x2a4] ss:$48 sps:$4 sm:$0xff]  }
  0x66   :  { %700 = vmatpush1.bf16.msra.mxu0 %v5726_v10  ;;  %786 = vmatpush1.bf16.msra.mxu1 %v5727_v11  ;;  %v5754_v29 = vld [vmem:[#allocation7 + $0x2ac] ss:$48 sps:$4 sm:$0xff]   ;;  %v5756_v30 = vld [vmem:[#allocation7 + $0x2a0] ss:$48 sps:$4 sm:$0xff]   ;;  %v5757_v31 = vld [vmem:[#allocation7 + $0x2a8] ss:$48 sps:$4 sm:$0xff]  }
  0x67   :  { %701 = vmatprep.subr.bf16.mxu0 %v5728_v12  ;;  %787 = vmatprep.subr.bf16.mxu1 %v5730_v13  ;;  %v5758_v32 = vld [vmem:[#allocation7 + $0x304] ss:$48 sps:$4 sm:$0xff]   ;;  %v5760_v33 = vld [vmem:[#allocation7 + $0x30c] ss:$48 sps:$4 sm:$0xff]   ;;  %v5762_v34 = vld [vmem:[#allocation7 + $0x300] ss:$48 sps:$4 sm:$0xff]  }
  0x68   :  { %v5763_v35 = vld [vmem:[#allocation7 + $0x308] ss:$48 sps:$4 sm:$0xff]   ;;  %v5764_v36 = vld [vmem:[#allocation7 + $0x364] ss:$48 sps:$4 sm:$0xff]   ;;  %v5766_v37 = vld [vmem:[#allocation7 + $0x36c] ss:$48 sps:$4 sm:$0xff]  }
  0x69   :  { %v5768_v38 = vld [vmem:[#allocation7 + $0x360] ss:$48 sps:$4 sm:$0xff]   ;;  %v5769_v39 = vld [vmem:[#allocation7 + $0x368] ss:$48 sps:$4 sm:$0xff]   ;;  %v5770_v40 = vld [vmem:[#allocation7 + $0x3c4] ss:$48 sps:$4 sm:$0xff]  }
  0x6a   :  { %702 = vmatpush1.bf16.msra.mxu0 %v5732_v14  ;;  %788 = vmatpush1.bf16.msra.mxu1 %v5733_v15  ;;  %v5772_v41 = vld [vmem:[#allocation7 + $0x3cc] ss:$48 sps:$4 sm:$0xff]   ;;  %v5774_v42 = vld [vmem:[#allocation7 + $0x3c0] ss:$48 sps:$4 sm:$0xff]   ;;  %v5775_v43 = vld [vmem:[#allocation7 + $0x3c8] ss:$48 sps:$4 sm:$0xff]  }
  0x6b   :  { %703 = vmatprep.subr.bf16.mxu0 %v5734_v16  ;;  %789 = vmatprep.subr.bf16.mxu1 %v5736_v17  ;;  %v5776_v44 = vld [vmem:[#allocation7 + $0x424] ss:$48 sps:$4 sm:$0xff]   ;;  %v5778_v45 = vld [vmem:[#allocation7 + $0x42c] ss:$48 sps:$4 sm:$0xff]   ;;  %v5780_v48 = vld [vmem:[#allocation7 + $0x420] ss:$48 sps:$4 sm:$0xff]  }
  0x6c   :  { %v89_v46 = vld [vmem:[#allocation4 + $0x8] sm:$0xff]  ;;  %v92_v47 = vld [vmem:[#allocation4 + $0x20] sm:$0xff]  ;;  %v91_v5 = vld [vmem:[#allocation4 + $0x18] sm:$0xff]  ;;  %v6677_v16 = vmov 0   ;;  %s6678_s5 = smov [#allocation13]  }
  0x6d   :  { %v5781_v49 = vld [vmem:[#allocation7 + $0x428] ss:$48 sps:$4 sm:$0xff]   ;;  %v6777_v50 = vpack.c.bf16 %v92_v47, %v89_v46  ;;  %v5782_v51 = vld [vmem:[#allocation7 + $0x484] ss:$48 sps:$4 sm:$0xff]   ;;  %v5784_v52 = vld [vmem:[#allocation7 + $0x48c] ss:$48 sps:$4 sm:$0xff]  }
  0x6e   :  { %704 = vmatpush1.bf16.msra.mxu0 %v5738_v18  ;;  %790 = vmatpush1.bf16.msra.mxu1 %v5739_v19  ;;  %v5786_v53 = vld [vmem:[#allocation7 + $0x480] ss:$48 sps:$4 sm:$0xff]   ;;  %v5787_v54 = vld [vmem:[#allocation7 + $0x488] ss:$48 sps:$4 sm:$0xff]   ;;  %v5788_v55 = vld [vmem:[#allocation7 + $0x4e4] ss:$48 sps:$4 sm:$0xff]  }
  0x6f   :  { %705 = vmatprep.subr.bf16.mxu0 %v5740_v20  ;;  %791 = vmatprep.subr.bf16.mxu1 %v5742_v21  ;;  %v5790_v56 = vld [vmem:[#allocation7 + $0x4ec] ss:$48 sps:$4 sm:$0xff]   ;;  %v5792_v57 = vld [vmem:[#allocation7 + $0x4e0] ss:$48 sps:$4 sm:$0xff]   ;;  %v5793_v58 = vld [vmem:[#allocation7 + $0x4e8] ss:$48 sps:$4 sm:$0xff]  }
  0x70   :  { %727 = vmatprep.mubr.bf16.mxu0 %v6777_v50  ;;  %813 = vmatprep.mubr.bf16.mxu1 %v6777_v50  ;;  %v5794_v59 = vld [vmem:[#allocation7 + $0x544] ss:$48 sps:$4 sm:$0xff]   ;;  %v5796_v60 = vld [vmem:[#allocation7 + $0x54c] ss:$48 sps:$4 sm:$0xff]   ;;  %v5798_v61 = vld [vmem:[#allocation7 + $0x540] ss:$48 sps:$4 sm:$0xff]  }
  0x71   :  { %v5799_v62 = vld [vmem:[#allocation7 + $0x548] ss:$48 sps:$4 sm:$0xff]   ;;  %v5800_v63 = vld [vmem:[#allocation7 + $0x5a4] ss:$48 sps:$4 sm:$0xff]   ;;  %v5802_v0 = vld [vmem:[#allocation7 + $0x5ac] ss:$48 sps:$4 sm:$0xff]  }
  0x72   :  { %706 = vmatpush1.bf16.msra.mxu0 %v5744_v22  ;;  %792 = vmatpush1.bf16.msra.mxu1 %v5745_v23  ;;  %v5804_v1 = vld [vmem:[#allocation7 + $0x5a0] ss:$48 sps:$4 sm:$0xff]   ;;  %v5805_v2 = vld [vmem:[#allocation7 + $0x5a8] ss:$48 sps:$4 sm:$0xff]   ;;  %v5808_v3 = vld [vmem:[#allocation7 + $0x604] ss:$48 sps:$4 sm:$0xff]  }
  0x73   :  { %707 = vmatprep.subr.bf16.mxu0 %v5746_v24  ;;  %793 = vmatprep.subr.bf16.mxu1 %v5748_v25  ;;  %v88_v4 = vld [vmem:[#allocation4] sm:$0xff]  ;;  %v5811_v6 = vld [vmem:[#allocation7 + $0x60c] ss:$48 sps:$4 sm:$0xff]   ;;  %v5809_v9 = vld [vmem:[#allocation7 + $0x608] ss:$48 sps:$4 sm:$0xff]   ;;  %s4907_s9 = sshll.u32 %s6678_s5, 4  ;;  %s4908_s9 = int_to_ptr.vmem [resolvable:$true] %s4907_s9 }
  0x74   :  { %v5806_v7 = vld [vmem:[#allocation7 + $0x600] ss:$48 sps:$4 sm:$0xff]   ;;  %v6781_v8 = vpack.c.bf16 %v91_v5, %v88_v4  ;;  %v5814_v10 = vld [vmem:[#allocation7 + $0x664] ss:$48 sps:$4 sm:$0xff]   ;;  %v5817_v11 = vld [vmem:[#allocation7 + $0x66c] ss:$48 sps:$4 sm:$0xff]   ;;  %p6641_p13 = scmp.lt.s32.totalorder %s4908_s9, %s4908_s9 }
  0x75   :  { %v5812_v12 = vld [vmem:[#allocation7 + $0x660] ss:$48 sps:$4 sm:$0xff]   ;;  %v5815_v13 = vld [vmem:[#allocation7 + $0x668] ss:$48 sps:$4 sm:$0xff]   ;;  %v5820_v14 = vld [vmem:[#allocation7 + $0x6c4] ss:$48 sps:$4 sm:$0xff]  }
  0x76   :  { %708 = vmatpush1.bf16.msra.mxu0 %v5750_v26  ;;  %794 = vmatpush1.bf16.msra.mxu1 %v5751_v27  ;;  %v5823_v15 = vld [vmem:[#allocation7 + $0x6cc] ss:$48 sps:$4 sm:$0xff]   ;;  %v5818_v17 = vld [vmem:[#allocation7 + $0x6c0] ss:$48 sps:$4 sm:$0xff]   ;;  %v5821_v18 = vld [vmem:[#allocation7 + $0x6c8] ss:$48 sps:$4 sm:$0xff]  }
  0x77   :  { %709 = vmatprep.subr.bf16.mxu0 %v5752_v28  ;;  %795 = vmatprep.subr.bf16.mxu1 %v5754_v29  ;;  %v5826_v19 = vld [vmem:[#allocation7 + $0x724] ss:$48 sps:$4 sm:$0xff]   ;;  %v5829_v20 = vld [vmem:[#allocation7 + $0x72c] ss:$48 sps:$4 sm:$0xff]   ;;  %v5824_v21 = vld [vmem:[#allocation7 + $0x720] ss:$48 sps:$4 sm:$0xff]  }
  0x78   :  { %v5827_v22 = vld [vmem:[#allocation7 + $0x728] ss:$48 sps:$4 sm:$0xff]   ;;  %v5832_v23 = vld [vmem:[#allocation7 + $0x784] ss:$48 sps:$4 sm:$0xff]   ;;  %v5835_v24 = vld [vmem:[#allocation7 + $0x78c] ss:$48 sps:$4 sm:$0xff]  }
  0x79   :  { %v5830_v25 = vld [vmem:[#allocation7 + $0x780] ss:$48 sps:$4 sm:$0xff]   ;;  %v5833_v26 = vld [vmem:[#allocation7 + $0x788] ss:$48 sps:$4 sm:$0xff]   ;;  %v5838_v27 = vld [vmem:[#allocation7 + $0x7e4] ss:$48 sps:$4 sm:$0xff]  }
  0x7a   :  { %710 = vmatpush1.bf16.msra.mxu0 %v5756_v30  ;;  %796 = vmatpush1.bf16.msra.mxu1 %v5757_v31  ;;  %v5841_v28 = vld [vmem:[#allocation7 + $0x7ec] ss:$48 sps:$4 sm:$0xff]   ;;  %v5836_v29 = vld [vmem:[#allocation7 + $0x7e0] ss:$48 sps:$4 sm:$0xff]   ;;  %v5839_v30 = vld [vmem:[#allocation7 + $0x7e8] ss:$48 sps:$4 sm:$0xff]  }
  0x7b   :  { %711 = vmatprep.subr.bf16.mxu0 %v5758_v32  ;;  %797 = vmatprep.subr.bf16.mxu1 %v5760_v33  ;;  %v5844_v31 = vld [vmem:[#allocation7 + $0x844] ss:$48 sps:$4 sm:$0xff]   ;;  %v5847_v32 = vld [vmem:[#allocation7 + $0x84c] ss:$48 sps:$4 sm:$0xff]   ;;  %v5842_v33 = vld [vmem:[#allocation7 + $0x840] ss:$48 sps:$4 sm:$0xff]  }
  0x7c   :  { %v5862_v46 = vld [vmem:[#allocation7 + $0x74] ss:$48 sps:$4 sm:$0xff]   ;;  %v5865_v47 = vld [vmem:[#allocation7 + $0x7c] ss:$48 sps:$4 sm:$0xff]   ;;  %v5890_v5 = vld [vmem:[#allocation7 + $0x250] ss:$48 sps:$4 sm:$0xff]  }
  0x7d   :  { %v5895_v4 = vld [vmem:[#allocation7 + $0x25c] ss:$48 sps:$4 sm:$0xff]   ;;  %s6636_s10 = scalar_lea.vmem %s4908_s9, 768 }
  0x7e   :  { %712 = vmatpush1.bf16.msra.mxu0 %v5762_v34  ;;  %798 = vmatpush1.bf16.msra.mxu1 %v5763_v35  ;;  %v5845_v34 = vld [vmem:[#allocation7 + $0x848] ss:$48 sps:$4 sm:$0xff]   ;;  %v5850_v35 = vld [vmem:[#allocation7 + $0x8a4] ss:$48 sps:$4 sm:$0xff]   ;;  %p6637_p12 = scmp.ne.s32.totalorder %s4908_s9, %s6636_s10  ;;  %p6642_p0 = scmp.lt.s32.totalorder %s6636_s10, %s6636_s10 }
  0x7f   :  { %713 = vmatprep.subr.bf16.mxu0 %v5764_v36  ;;  %799 = vmatprep.subr.bf16.mxu1 %v5766_v37  ;;  %v5853_v36 = vld [vmem:[#allocation7 + $0x8ac] ss:$48 sps:$4 sm:$0xff]   ;;  %v5848_v37 = vld [vmem:[#allocation7 + $0x8a0] ss:$48 sps:$4 sm:$0xff]  }
  0x80   :  { %p6643_p1 = por %p6642_p0, %p6641_p13 }
  0x82   :  { %714 = vmatpush1.bf16.msra.mxu0 %v5768_v38  ;;  %800 = vmatpush1.bf16.msra.mxu1 %v5769_v39  ;;  %v5851_v38 = vld [vmem:[#allocation7 + $0x8a8] ss:$48 sps:$4 sm:$0xff]   ;;  %v90_v39 = vld [vmem:[#allocation4 + $0x10] sm:$0xff]  ;;  %p6644_p2 = pnand %p6643_p1, %p6637_p12 }
  0x83   :  { %715 = vmatprep.subr.bf16.mxu0 %v5770_v40  ;;  %801 = vmatprep.subr.bf16.mxu1 %v5772_v41  ;;  %v93_v40 = vld [vmem:[#allocation4 + $0x28] sm:$0xff]  ;;  %v5856_v41 = vld [vmem:[#allocation7 + $0x14] ss:$48 sps:$4 sm:$0xff]  }
  0x86   :  { %716 = vmatpush1.bf16.msra.mxu0 %v5774_v42  ;;  %802 = vmatpush1.bf16.msra.mxu1 %v5775_v43  ;;  %v5859_v42 = vld [vmem:[#allocation7 + $0x1c] ss:$48 sps:$4 sm:$0xff]   ;;  %v6787_v43 = vpack.c.bf16 %v93_v40, %v90_v39  ;;  %v5938_v39 = vld [vmem:[#allocation7 + $0x550] ss:$48 sps:$4 sm:$0xff]   ;;  %v5941_v40 = vld [vmem:[#allocation7 + $0x558] ss:$48 sps:$4 sm:$0xff]  }
  0x87   :  { %717 = vmatprep.subr.bf16.mxu0 %v5776_v44  ;;  %803 = vmatprep.subr.bf16.mxu1 %v5778_v45  ;;  %v5854_v44 = vld [vmem:[#allocation7 + $0x10] ss:$48 sps:$4 sm:$0xff]   ;;  %v5857_v45 = vld [vmem:[#allocation7 + $0x18] ss:$48 sps:$4 sm:$0xff]  }
  0x8a   :  { %718 = vmatpush1.bf16.msra.mxu0 %v5780_v48  ;;  %804 = vmatpush1.bf16.msra.mxu1 %v5781_v49  ;;  %v5860_v48 = vld [vmem:[#allocation7 + $0x70] ss:$48 sps:$4 sm:$0xff]   ;;  %v5863_v49 = vld [vmem:[#allocation7 + $0x78] ss:$48 sps:$4 sm:$0xff]  }
  0x8b   :  { %719 = vmatprep.subr.bf16.mxu0 %v5782_v51  ;;  %805 = vmatprep.subr.bf16.mxu1 %v5784_v52  ;;  %v5868_v51 = vld [vmem:[#allocation7 + $0xd4] ss:$48 sps:$4 sm:$0xff]   ;;  %v5871_v52 = vld [vmem:[#allocation7 + $0xdc] ss:$48 sps:$4 sm:$0xff]  }
  0x8e   :  { %720 = vmatpush1.bf16.msra.mxu0 %v5786_v53  ;;  %806 = vmatpush1.bf16.msra.mxu1 %v5787_v54  ;;  %v5866_v53 = vld [vmem:[#allocation7 + $0xd0] ss:$48 sps:$4 sm:$0xff]   ;;  %v5869_v54 = vld [vmem:[#allocation7 + $0xd8] ss:$48 sps:$4 sm:$0xff]  }
  0x8f   :  { %721 = vmatprep.subr.bf16.mxu0 %v5788_v55  ;;  %807 = vmatprep.subr.bf16.mxu1 %v5790_v56  ;;  %v5874_v55 = vld [vmem:[#allocation7 + $0x134] ss:$48 sps:$4 sm:$0xff]   ;;  %v5877_v56 = vld [vmem:[#allocation7 + $0x13c] ss:$48 sps:$4 sm:$0xff]  }
  0x92   :  { %722 = vmatpush1.bf16.msra.mxu0 %v5792_v57  ;;  %808 = vmatpush1.bf16.msra.mxu1 %v5793_v58  ;;  %v5872_v57 = vld [vmem:[#allocation7 + $0x130] ss:$48 sps:$4 sm:$0xff]   ;;  %v5875_v58 = vld [vmem:[#allocation7 + $0x138] ss:$48 sps:$4 sm:$0xff]  }
  0x93   :  { %723 = vmatprep.subr.bf16.mxu0 %v5794_v59  ;;  %809 = vmatprep.subr.bf16.mxu1 %v5796_v60  ;;  %v5880_v59 = vld [vmem:[#allocation7 + $0x194] ss:$48 sps:$4 sm:$0xff]   ;;  %v5883_v60 = vld [vmem:[#allocation7 + $0x19c] ss:$48 sps:$4 sm:$0xff]  }
  0x96   :  { %724 = vmatpush1.bf16.msra.mxu0 %v5798_v61  ;;  %810 = vmatpush1.bf16.msra.mxu1 %v5799_v62  ;;  %v5878_v61 = vld [vmem:[#allocation7 + $0x190] ss:$48 sps:$4 sm:$0xff]   ;;  %v5881_v62 = vld [vmem:[#allocation7 + $0x198] ss:$48 sps:$4 sm:$0xff]  }
  0x97   :  { %725 = vmatprep.subr.bf16.mxu0 %v5800_v63  ;;  %811 = vmatprep.subr.bf16.mxu1 %v5802_v0  ;;  %v5886_v63 = vld [vmem:[#allocation7 + $0x1f4] ss:$48 sps:$4 sm:$0xff]   ;;  %v5889_v0 = vld [vmem:[#allocation7 + $0x1fc] ss:$48 sps:$4 sm:$0xff]  }
  0x9a   :  { %726 = vmatpush1.bf16.msra.mxu0 %v5804_v1  ;;  %812 = vmatpush1.bf16.msra.mxu1 %v5805_v2  ;;  %v5884_v1 = vld [vmem:[#allocation7 + $0x1f0] ss:$48 sps:$4 sm:$0xff]   ;;  %v5887_v2 = vld [vmem:[#allocation7 + $0x1f8] ss:$48 sps:$4 sm:$0xff]  }
  0x9b   :  { %738 = vmatprep.subr.bf16.mxu0 %v5808_v3  ;;  %824 = vmatprep.subr.bf16.mxu1 %v5811_v6  ;;  %v5892_v3 = vld [vmem:[#allocation7 + $0x254] ss:$48 sps:$4 sm:$0xff]   ;;  %v5893_v6 = vld [vmem:[#allocation7 + $0x258] ss:$48 sps:$4 sm:$0xff]  }
  0x9d   :  { %728 = vmatmul.mubr.bf16.vlgmr.msra.gmra.mrb[0].mxu0 %v6781_v8  ;;  %814 = vmatmul.mubr.bf16.vlgmr.msra.gmra.mrb[0].mxu1 %v6781_v8 }
  0x9e   :  { %739 = vmatpush1.bf16.msra.mxu0 %v5806_v7  ;;  %825 = vmatpush1.bf16.msra.mxu1 %v5809_v9  ;;  %v5898_v7 = vld [vmem:[#allocation7 + $0x2b4] ss:$48 sps:$4 sm:$0xff]   ;;  %v5901_v9 = vld [vmem:[#allocation7 + $0x2bc] ss:$48 sps:$4 sm:$0xff]  }
  0x9f   :  { %740 = vmatprep.subr.bf16.mxu0 %v5814_v10  ;;  %826 = vmatprep.subr.bf16.mxu1 %v5817_v11  ;;  %v5896_v10 = vld [vmem:[#allocation7 + $0x2b0] ss:$48 sps:$4 sm:$0xff]   ;;  %v5899_v11 = vld [vmem:[#allocation7 + $0x2b8] ss:$48 sps:$4 sm:$0xff]  }
  0xa0   :  { %770 = vmatprep.mubr.bf16.mxu0 %v6677_v16  ;;  %856 = vmatprep.mubr.bf16.mxu1 %v6677_v16 }
  0xa2   :  { %741 = vmatpush1.bf16.msra.mxu0 %v5812_v12  ;;  %827 = vmatpush1.bf16.msra.mxu1 %v5815_v13  ;;  %v5904_v12 = vld [vmem:[#allocation7 + $0x314] ss:$48 sps:$4 sm:$0xff]   ;;  %v5907_v13 = vld [vmem:[#allocation7 + $0x31c] ss:$48 sps:$4 sm:$0xff]  }
  0xa3   :  { %742 = vmatprep.subr.bf16.mxu0 %v5820_v14  ;;  %828 = vmatprep.subr.bf16.mxu1 %v5823_v15  ;;  %v5902_v14 = vld [vmem:[#allocation7 + $0x310] ss:$48 sps:$4 sm:$0xff]   ;;  %v5905_v15 = vld [vmem:[#allocation7 + $0x318] ss:$48 sps:$4 sm:$0xff]  }
  0xa6   :  { %743 = vmatpush1.bf16.msra.mxu0 %v5818_v17  ;;  %829 = vmatpush1.bf16.msra.mxu1 %v5821_v18  ;;  %v5910_v17 = vld [vmem:[#allocation7 + $0x374] ss:$48 sps:$4 sm:$0xff]   ;;  %v5913_v18 = vld [vmem:[#allocation7 + $0x37c] ss:$48 sps:$4 sm:$0xff]  }
  0xa7   :  { %744 = vmatprep.subr.bf16.mxu0 %v5826_v19  ;;  %830 = vmatprep.subr.bf16.mxu1 %v5829_v20  ;;  %v5908_v19 = vld [vmem:[#allocation7 + $0x370] ss:$48 sps:$4 sm:$0xff]   ;;  %v5911_v20 = vld [vmem:[#allocation7 + $0x378] ss:$48 sps:$4 sm:$0xff]  }
  0xaa   :  { %745 = vmatpush1.bf16.msra.mxu0 %v5824_v21  ;;  %831 = vmatpush1.bf16.msra.mxu1 %v5827_v22  ;;  %v5916_v21 = vld [vmem:[#allocation7 + $0x3d4] ss:$48 sps:$4 sm:$0xff]   ;;  %v5919_v22 = vld [vmem:[#allocation7 + $0x3dc] ss:$48 sps:$4 sm:$0xff]  }
  0xab   :  { %746 = vmatprep.subr.bf16.mxu0 %v5832_v23  ;;  %832 = vmatprep.subr.bf16.mxu1 %v5835_v24  ;;  %v5914_v23 = vld [vmem:[#allocation7 + $0x3d0] ss:$48 sps:$4 sm:$0xff]   ;;  %v5917_v24 = vld [vmem:[#allocation7 + $0x3d8] ss:$48 sps:$4 sm:$0xff]  }
  0xae   :  { %747 = vmatpush1.bf16.msra.mxu0 %v5830_v25  ;;  %833 = vmatpush1.bf16.msra.mxu1 %v5833_v26  ;;  %v5922_v25 = vld [vmem:[#allocation7 + $0x434] ss:$48 sps:$4 sm:$0xff]   ;;  %v5925_v26 = vld [vmem:[#allocation7 + $0x43c] ss:$48 sps:$4 sm:$0xff]  }
  0xaf   :  { %748 = vmatprep.subr.bf16.mxu0 %v5838_v27  ;;  %834 = vmatprep.subr.bf16.mxu1 %v5841_v28  ;;  %v5920_v27 = vld [vmem:[#allocation7 + $0x430] ss:$48 sps:$4 sm:$0xff]   ;;  %v5923_v28 = vld [vmem:[#allocation7 + $0x438] ss:$48 sps:$4 sm:$0xff]  }
  0xb2   :  { %749 = vmatpush1.bf16.msra.mxu0 %v5836_v29  ;;  %835 = vmatpush1.bf16.msra.mxu1 %v5839_v30  ;;  %v5928_v29 = vld [vmem:[#allocation7 + $0x494] ss:$48 sps:$4 sm:$0xff]   ;;  %v5931_v30 = vld [vmem:[#allocation7 + $0x49c] ss:$48 sps:$4 sm:$0xff]  }
  0xb3   :  { %750 = vmatprep.subr.bf16.mxu0 %v5844_v31  ;;  %836 = vmatprep.subr.bf16.mxu1 %v5847_v32  ;;  %v5926_v31 = vld [vmem:[#allocation7 + $0x490] ss:$48 sps:$4 sm:$0xff]   ;;  %v5929_v32 = vld [vmem:[#allocation7 + $0x498] ss:$48 sps:$4 sm:$0xff]  }
  0xb6   :  { %751 = vmatpush1.bf16.msra.mxu0 %v5842_v33  ;;  %837 = vmatpush1.bf16.msra.mxu1 %v5845_v34  ;;  %v5934_v33 = vld [vmem:[#allocation7 + $0x4f4] ss:$48 sps:$4 sm:$0xff]   ;;  %v5937_v34 = vld [vmem:[#allocation7 + $0x4fc] ss:$48 sps:$4 sm:$0xff]  }
  0xb7   :  { %752 = vmatprep.subr.bf16.mxu0 %v5850_v35  ;;  %838 = vmatprep.subr.bf16.mxu1 %v5853_v36  ;;  %v5932_v35 = vld [vmem:[#allocation7 + $0x4f0] ss:$48 sps:$4 sm:$0xff]   ;;  %v5935_v36 = vld [vmem:[#allocation7 + $0x4f8] ss:$48 sps:$4 sm:$0xff]  }
  0xba   :  { %753 = vmatpush1.bf16.msra.mxu0 %v5848_v37  ;;  %839 = vmatpush1.bf16.msra.mxu1 %v5851_v38  ;;  %v5940_v37 = vld [vmem:[#allocation7 + $0x554] ss:$48 sps:$4 sm:$0xff]   ;;  %v5943_v38 = vld [vmem:[#allocation7 + $0x55c] ss:$48 sps:$4 sm:$0xff]  }
  0xbb   :  { %1605 = vmatprep.subr.bf16.mxu0 %v5856_v41  ;;  %1691 = vmatprep.subr.bf16.mxu1 %v5859_v42  ;;  %v5946_v41 = vld [vmem:[#allocation7 + $0x5b4] ss:$48 sps:$4 sm:$0xff]   ;;  %v5949_v42 = vld [vmem:[#allocation7 + $0x5bc] ss:$48 sps:$4 sm:$0xff]  }
  0xbd   :  { %771 = vmatmul.mubr.bf16.vlgmr.msra.gmra.mrb[0].mxu0 %v6787_v43  ;;  %857 = vmatmul.mubr.bf16.vlgmr.msra.gmra.mrb[0].mxu1 %v6787_v43 }
  0xbe   :  { %1606 = vmatpush1.bf16.msra.mxu0 %v5854_v44  ;;  %1692 = vmatpush1.bf16.msra.mxu1 %v5857_v45  ;;  %v5944_v44 = vld [vmem:[#allocation7 + $0x5b0] ss:$48 sps:$4 sm:$0xff]   ;;  %v5947_v45 = vld [vmem:[#allocation7 + $0x5b8] ss:$48 sps:$4 sm:$0xff]  }
  0xbf   :  { %1607 = vmatprep.subr.bf16.mxu0 %v5862_v46  ;;  %1693 = vmatprep.subr.bf16.mxu1 %v5865_v47  ;;  %v5952_v46 = vld [vmem:[#allocation7 + $0x614] ss:$48 sps:$4 sm:$0xff]   ;;  %v5955_v47 = vld [vmem:[#allocation7 + $0x61c] ss:$48 sps:$4 sm:$0xff]  }
  0xc0   :  { %1637 = vmatprep.mubr.bf16.mxu0 %v6777_v50  ;;  %1723 = vmatprep.mubr.bf16.mxu1 %v6777_v50 }
  0xc2   :  { %1608 = vmatpush1.bf16.msra.mxu0 %v5860_v48  ;;  %1694 = vmatpush1.bf16.msra.mxu1 %v5863_v49  ;;  %v5950_v48 = vld [vmem:[#allocation7 + $0x610] ss:$48 sps:$4 sm:$0xff]   ;;  %v5953_v49 = vld [vmem:[#allocation7 + $0x618] ss:$48 sps:$4 sm:$0xff]  }
  0xc3   :  { %1609 = vmatprep.subr.bf16.mxu0 %v5868_v51  ;;  %1695 = vmatprep.subr.bf16.mxu1 %v5871_v52  ;;  %v5958_v51 = vld [vmem:[#allocation7 + $0x674] ss:$48 sps:$4 sm:$0xff]   ;;  %v5961_v52 = vld [vmem:[#allocation7 + $0x67c] ss:$48 sps:$4 sm:$0xff]  }
  0xc6   :  { %1610 = vmatpush1.bf16.msra.mxu0 %v5866_v53  ;;  %1696 = vmatpush1.bf16.msra.mxu1 %v5869_v54  ;;  %v5956_v53 = vld [vmem:[#allocation7 + $0x670] ss:$48 sps:$4 sm:$0xff]   ;;  %v5959_v54 = vld [vmem:[#allocation7 + $0x678] ss:$48 sps:$4 sm:$0xff]  }
  0xc7   :  { %1611 = vmatprep.subr.bf16.mxu0 %v5874_v55  ;;  %1697 = vmatprep.subr.bf16.mxu1 %v5877_v56  ;;  %v5964_v55 = vld [vmem:[#allocation7 + $0x6d4] ss:$48 sps:$4 sm:$0xff]   ;;  %v5967_v56 = vld [vmem:[#allocation7 + $0x6dc] ss:$48 sps:$4 sm:$0xff]  }
  0xca   :  { %1612 = vmatpush1.bf16.msra.mxu0 %v5872_v57  ;;  %1698 = vmatpush1.bf16.msra.mxu1 %v5875_v58  ;;  %v5962_v57 = vld [vmem:[#allocation7 + $0x6d0] ss:$48 sps:$4 sm:$0xff]   ;;  %v5965_v58 = vld [vmem:[#allocation7 + $0x6d8] ss:$48 sps:$4 sm:$0xff]  }
  0xcb   :  { %1613 = vmatprep.subr.bf16.mxu0 %v5880_v59  ;;  %1699 = vmatprep.subr.bf16.mxu1 %v5883_v60  ;;  %v5970_v59 = vld [vmem:[#allocation7 + $0x734] ss:$48 sps:$4 sm:$0xff]   ;;  %v5973_v60 = vld [vmem:[#allocation7 + $0x73c] ss:$48 sps:$4 sm:$0xff]  }
  0xce   :  { %1614 = vmatpush1.bf16.msra.mxu0 %v5878_v61  ;;  %1700 = vmatpush1.bf16.msra.mxu1 %v5881_v62  ;;  %v5968_v61 = vld [vmem:[#allocation7 + $0x730] ss:$48 sps:$4 sm:$0xff]   ;;  %v5971_v62 = vld [vmem:[#allocation7 + $0x738] ss:$48 sps:$4 sm:$0xff]  }
  0xcf   :  { %1615 = vmatprep.subr.bf16.mxu0 %v5886_v63  ;;  %1701 = vmatprep.subr.bf16.mxu1 %v5889_v0  ;;  %v5976_v63 = vld [vmem:[#allocation7 + $0x794] ss:$48 sps:$4 sm:$0xff]   ;;  %v5979_v0 = vld [vmem:[#allocation7 + $0x79c] ss:$48 sps:$4 sm:$0xff]  }
  0xd2   :  { %1616 = vmatpush1.bf16.msra.mxu0 %v5884_v1  ;;  %1702 = vmatpush1.bf16.msra.mxu1 %v5887_v2  ;;  %v5974_v1 = vld [vmem:[#allocation7 + $0x790] ss:$48 sps:$4 sm:$0xff]   ;;  %v5977_v2 = vld [vmem:[#allocation7 + $0x798] ss:$48 sps:$4 sm:$0xff]  }
  0xd3   :  { %1617 = vmatprep.subr.bf16.mxu0 %v5892_v3  ;;  %1703 = vmatprep.subr.bf16.mxu1 %v5895_v4  ;;  %v5982_v3 = vld [vmem:[#allocation7 + $0x7f4] ss:$48 sps:$4 sm:$0xff]   ;;  %v5985_v4 = vld [vmem:[#allocation7 + $0x7fc] ss:$48 sps:$4 sm:$0xff]  }
  0xd6   :  { %1618 = vmatpush1.bf16.msra.mxu0 %v5890_v5  ;;  %1704 = vmatpush1.bf16.msra.mxu1 %v5893_v6  ;;  %v5980_v5 = vld [vmem:[#allocation7 + $0x7f0] ss:$48 sps:$4 sm:$0xff]   ;;  %v5983_v6 = vld [vmem:[#allocation7 + $0x7f8] ss:$48 sps:$4 sm:$0xff]  }
  0xd7   :  { %1619 = vmatprep.subr.bf16.mxu0 %v5898_v7  ;;  %1705 = vmatprep.subr.bf16.mxu1 %v5901_v9  ;;  %v5988_v7 = vld [vmem:[#allocation7 + $0x854] ss:$48 sps:$4 sm:$0xff]   ;;  %v5991_v9 = vld [vmem:[#allocation7 + $0x85c] ss:$48 sps:$4 sm:$0xff]  }
  0xda   :  { %1620 = vmatpush1.bf16.msra.mxu0 %v5896_v10  ;;  %1706 = vmatpush1.bf16.msra.mxu1 %v5899_v11  ;;  %v5986_v10 = vld [vmem:[#allocation7 + $0x850] ss:$48 sps:$4 sm:$0xff]   ;;  %v5989_v11 = vld [vmem:[#allocation7 + $0x858] ss:$48 sps:$4 sm:$0xff]  }
  0xdb   :  { %1621 = vmatprep.subr.bf16.mxu0 %v5904_v12  ;;  %1707 = vmatprep.subr.bf16.mxu1 %v5907_v13  ;;  %v5994_v12 = vld [vmem:[#allocation7 + $0x8b4] ss:$48 sps:$4 sm:$0xff]   ;;  %v5997_v13 = vld [vmem:[#allocation7 + $0x8bc] ss:$48 sps:$4 sm:$0xff]  }
  0xde   :  { %1622 = vmatpush1.bf16.msra.mxu0 %v5902_v14  ;;  %1708 = vmatpush1.bf16.msra.mxu1 %v5905_v15  ;;  %v5992_v14 = vld [vmem:[#allocation7 + $0x8b0] ss:$48 sps:$4 sm:$0xff]   ;;  %v5995_v15 = vld [vmem:[#allocation7 + $0x8b8] ss:$48 sps:$4 sm:$0xff]  }
  0xdf   :  { %1623 = vmatprep.subr.bf16.mxu0 %v5910_v17  ;;  %1709 = vmatprep.subr.bf16.mxu1 %v5913_v18  ;;  %v6000_v17 = vld [vmem:[#allocation10 + $0x304] ss:$12 sps:$4 sm:$0xff]   ;;  %v5998_v18 = vld [vmem:[#allocation10 + $0x300] ss:$12 sps:$4 sm:$0xff]  }
  0xe2   :  { %1624 = vmatpush1.bf16.msra.mxu0 %v5908_v19  ;;  %1710 = vmatpush1.bf16.msra.mxu1 %v5911_v20  ;;  %v6003_v19 = vld [vmem:[#allocation10 + $0x31c] ss:$12 sps:$4 sm:$0xff]   ;;  %v6001_v20 = vld [vmem:[#allocation10 + $0x318] ss:$12 sps:$4 sm:$0xff]  }
  0xe3   :  { %1625 = vmatprep.subr.bf16.mxu0 %v5916_v21  ;;  %1711 = vmatprep.subr.bf16.mxu1 %v5919_v22  ;;  %v6025_v21 = vld [vmem:[#allocation10 + $0x3c8] ss:$12 sps:$4 sm:$0xff]  }
  0xe4   :  { %v6026_v22 = vld [vmem:[#allocation10 + $0x308] ss:$12 sps:$4 sm:$0xff]  }
  0xe6   :  { %1626 = vmatpush1.bf16.msra.mxu0 %v5914_v23  ;;  %1712 = vmatpush1.bf16.msra.mxu1 %v5917_v24  ;;  %v6006_v23 = vld [vmem:[#allocation10 + $0x334] ss:$12 sps:$4 sm:$0xff]  }
  0xe7   :  { %1627 = vmatprep.subr.bf16.mxu0 %v5922_v25  ;;  %1713 = vmatprep.subr.bf16.mxu1 %v5925_v26  ;;  %v6030_v24 = vld [vmem:[#allocation10 + $0x3e0] ss:$12 sps:$4 sm:$0xff]   ;;  %v6004_v26 = vld [vmem:[#allocation10 + $0x330] ss:$12 sps:$4 sm:$0xff]  }
  0xe8   :  { %v6031_v25 = vld [vmem:[#allocation10 + $0x320] ss:$12 sps:$4 sm:$0xff]  }
  0xea   :  { %1628 = vmatpush1.bf16.msra.mxu0 %v5920_v27  ;;  %1714 = vmatpush1.bf16.msra.mxu1 %v5923_v28  ;;  %v6035_v27 = vld [vmem:[#allocation10 + $0x3f8] ss:$12 sps:$4 sm:$0xff]  }
  0xeb   :  { %1629 = vmatprep.subr.bf16.mxu0 %v5928_v29  ;;  %1715 = vmatprep.subr.bf16.mxu1 %v5931_v30  ;;  %v6009_v28 = vld [vmem:[#allocation10 + $0x34c] ss:$12 sps:$4 sm:$0xff]   ;;  %v6007_v29 = vld [vmem:[#allocation10 + $0x348] ss:$12 sps:$4 sm:$0xff]   ;;  %v6012_v30 = vld [vmem:[#allocation10 + $0x364] ss:$12 sps:$4 sm:$0xff]  }
  0xee   :  { %1630 = vmatpush1.bf16.msra.mxu0 %v5926_v31  ;;  %1716 = vmatpush1.bf16.msra.mxu1 %v5929_v32  ;;  %v6036_v31 = vld [vmem:[#allocation10 + $0x338] ss:$12 sps:$4 sm:$0xff]   ;;  %v6040_v32 = vld [vmem:[#allocation10 + $0x410] ss:$12 sps:$4 sm:$0xff]  }
  0xef   :  { %1631 = vmatprep.subr.bf16.mxu0 %v5934_v33  ;;  %1717 = vmatprep.subr.bf16.mxu1 %v5937_v34  ;;  %v6041_v33 = vld [vmem:[#allocation10 + $0x350] ss:$12 sps:$4 sm:$0xff]   ;;  %v6010_v34 = vld [vmem:[#allocation10 + $0x360] ss:$12 sps:$4 sm:$0xff]  }
  0xf2   :  { %1632 = vmatpush1.bf16.msra.mxu0 %v5932_v35  ;;  %1718 = vmatpush1.bf16.msra.mxu1 %v5935_v36  ;;  %v6045_v35 = vld [vmem:[#allocation10 + $0x428] ss:$12 sps:$4 sm:$0xff]  }
  0xf3   :  { %1633 = vmatprep.subr.bf16.mxu0 %v5940_v37  ;;  %1719 = vmatprep.subr.bf16.mxu1 %v5943_v38  ;;  %v6015_v36 = vld [vmem:[#allocation10 + $0x37c] ss:$12 sps:$4 sm:$0xff]   ;;  %v6013_v38 = vld [vmem:[#allocation10 + $0x378] ss:$12 sps:$4 sm:$0xff]  }
  0xf4   :  { %v6046_v37 = vld [vmem:[#allocation10 + $0x368] ss:$12 sps:$4 sm:$0xff]  }
  0xf6   :  { %1634 = vmatpush1.bf16.msra.mxu0 %v5938_v39  ;;  %1720 = vmatpush1.bf16.msra.mxu1 %v5941_v40  ;;  %v6050_v39 = vld [vmem:[#allocation10 + $0x440] ss:$12 sps:$4 sm:$0xff]  }
  0xf7   :  { %1635 = vmatprep.subr.bf16.mxu0 %v5946_v41  ;;  %1721 = vmatprep.subr.bf16.mxu1 %v5949_v42  ;;  %v6018_v40 = vld [vmem:[#allocation10 + $0x394] ss:$12 sps:$4 sm:$0xff]   ;;  %v6016_v42 = vld [vmem:[#allocation10 + $0x390] ss:$12 sps:$4 sm:$0xff]  }
  0xf8   :  { %v6051_v41 = vld [vmem:[#allocation10 + $0x380] ss:$12 sps:$4 sm:$0xff]  }
  0xfa   :  { %1636 = vmatpush1.bf16.msra.mxu0 %v5944_v44  ;;  %1722 = vmatpush1.bf16.msra.mxu1 %v5947_v45  ;;  %v6021_v44 = vld [vmem:[#allocation10 + $0x3ac] ss:$12 sps:$4 sm:$0xff]   ;;  %v6019_v45 = vld [vmem:[#allocation10 + $0x3a8] ss:$12 sps:$4 sm:$0xff]  }
  0xfb   :  { %1648 = vmatprep.subr.bf16.mxu0 %v5952_v46  ;;  %1734 = vmatprep.subr.bf16.mxu1 %v5955_v47  ;;  %v6024_v46 = vld [vmem:[#allocation10 + $0x3c4] ss:$12 sps:$4 sm:$0xff]   ;;  %v6022_v47 = vld [vmem:[#allocation10 + $0x3c0] ss:$12 sps:$4 sm:$0xff]  }
  0xfd   :  { %1638 = vmatmul.mubr.bf16.vlgmr.msra.gmra.mrb[4].mxu0 %v6781_v8  ;;  %1724 = vmatmul.mubr.bf16.vlgmr.msra.gmra.mrb[4].mxu1 %v6781_v8 }
  0xfe   :  { %1649 = vmatpush1.bf16.msra.mxu0 %v5950_v48  ;;  %1735 = vmatpush1.bf16.msra.mxu1 %v5953_v49  ;;  %v6029_v48 = vld [vmem:[#allocation10 + $0x3dc] ss:$12 sps:$4 sm:$0xff]   ;;  %v6027_v49 = vld [vmem:[#allocation10 + $0x3d8] ss:$12 sps:$4 sm:$0xff]  }
  0xff   :  { %1650 = vmatprep.subr.bf16.mxu0 %v5958_v51  ;;  %1736 = vmatprep.subr.bf16.mxu1 %v5961_v52  ;;  %v6034_v51 = vld [vmem:[#allocation10 + $0x3f4] ss:$12 sps:$4 sm:$0xff]   ;;  %v6032_v52 = vld [vmem:[#allocation10 + $0x3f0] ss:$12 sps:$4 sm:$0xff]  }
 0x100   :  { %1680 = vmatprep.mubr.bf16.mxu0 %v6677_v16  ;;  %1766 = vmatprep.mubr.bf16.mxu1 %v6677_v16 }
 0x102   :  { %1651 = vmatpush1.bf16.msra.mxu0 %v5956_v53  ;;  %1737 = vmatpush1.bf16.msra.mxu1 %v5959_v54  ;;  %v6039_v53 = vld [vmem:[#allocation10 + $0x40c] ss:$12 sps:$4 sm:$0xff]   ;;  %v6037_v54 = vld [vmem:[#allocation10 + $0x408] ss:$12 sps:$4 sm:$0xff]  }
 0x103   :  { %1652 = vmatprep.subr.bf16.mxu0 %v5964_v55  ;;  %1738 = vmatprep.subr.bf16.mxu1 %v5967_v56  ;;  %v6044_v55 = vld [vmem:[#allocation10 + $0x424] ss:$12 sps:$4 sm:$0xff]   ;;  %v6042_v56 = vld [vmem:[#allocation10 + $0x420] ss:$12 sps:$4 sm:$0xff]  }
 0x106   :  { %1653 = vmatpush1.bf16.msra.mxu0 %v5962_v57  ;;  %1739 = vmatpush1.bf16.msra.mxu1 %v5965_v58  ;;  %v6049_v57 = vld [vmem:[#allocation10 + $0x43c] ss:$12 sps:$4 sm:$0xff]   ;;  %v6047_v58 = vld [vmem:[#allocation10 + $0x438] ss:$12 sps:$4 sm:$0xff]  }
 0x107   :  { %1654 = vmatprep.subr.bf16.mxu0 %v5970_v59  ;;  %1740 = vmatprep.subr.bf16.mxu1 %v5973_v60  ;;  %v6054_v59 = vld [vmem:[#allocation10 + $0x454] ss:$12 sps:$4 sm:$0xff]   ;;  %v6055_v60 = vld [vmem:[#allocation10 + $0x458] ss:$12 sps:$4 sm:$0xff]  }
 0x10a   :  { %1655 = vmatpush1.bf16.msra.mxu0 %v5968_v61  ;;  %1741 = vmatpush1.bf16.msra.mxu1 %v5971_v62  ;;  %v6052_v61 = vld [vmem:[#allocation10 + $0x450] ss:$12 sps:$4 sm:$0xff]   ;;  %v6056_v62 = vld [vmem:[#allocation10 + $0x398] ss:$12 sps:$4 sm:$0xff]  }
 0x10b   :  { %1656 = vmatprep.subr.bf16.mxu0 %v5976_v63  ;;  %1742 = vmatprep.subr.bf16.mxu1 %v5979_v0  ;;  %v6059_v63 = vld [vmem:[#allocation10 + $0x46c] ss:$12 sps:$4 sm:$0xff]   ;;  %v6060_v0 = vld [vmem:[#allocation10 + $0x470] ss:$12 sps:$4 sm:$0xff]  }
 0x10e   :  { %1657 = vmatpush1.bf16.msra.mxu0 %v5974_v1  ;;  %1743 = vmatpush1.bf16.msra.mxu1 %v5977_v2  ;;  %v6057_v1 = vld [vmem:[#allocation10 + $0x468] ss:$12 sps:$4 sm:$0xff]   ;;  %v6061_v2 = vld [vmem:[#allocation10 + $0x3b0] ss:$12 sps:$4 sm:$0xff]  }
 0x10f   :  { %1658 = vmatprep.subr.bf16.mxu0 %v5982_v3  ;;  %1744 = vmatprep.subr.bf16.mxu1 %v5985_v4  ;;  %v6064_v3 = vld [vmem:[#allocation10 + $0x484] ss:$12 sps:$4 sm:$0xff]   ;;  %v6065_v4 = vld [vmem:[#allocation10 + $0x548] ss:$12 sps:$4 sm:$0xff]  }
 0x112   :  { %1659 = vmatpush1.bf16.msra.mxu0 %v5980_v5  ;;  %1745 = vmatpush1.bf16.msra.mxu1 %v5983_v6  ;;  %v195_v5 = vlaneseq }
 0x113   :  { %1660 = vmatprep.subr.bf16.mxu0 %v5988_v7  ;;  %1746 = vmatprep.subr.bf16.mxu1 %v5991_v9  ;;  %v193_v7 = vld [vmem:[#allocation9] sm:$0xf] }
 0x114   :  { %v196_v6 = vshrl.u32 %v195_v5, 7 }
 0x116   :  { %1661 = vmatpush1.bf16.msra.mxu0 %v5986_v10  ;;  %1747 = vmatpush1.bf16.msra.mxu1 %v5989_v11  ;;  %v6799_v9 = vsub.s32 0, %v196_v6  ;;  %v6801_v10 = vsub.s32 2, %v196_v6  ;;  %v6803_v11 = vsub.s32 1, %v196_v6 }
 0x117   :  { %1662 = vmatprep.subr.bf16.mxu0 %v5994_v12  ;;  %1748 = vmatprep.subr.bf16.mxu1 %v5997_v13  ;;  %v6805_v12 = vsub.s32 3, %v196_v6 }
 0x118   :  { %v198_v13 = vrot.slane %v193_v7, %v6799_v9 }
 0x11a   :  { %1663 = vmatpush1.bf16.msra.mxu0 %v5992_v14  ;;  %1749 = vmatpush1.bf16.msra.mxu1 %v5995_v15  ;;  %v206_v14 = vrot.slane %v193_v7, %v6801_v10  ;;  %v202_v15 = vrot.slane %v193_v7, %v6803_v11 }
 0x11b   :  { %2429 = vmatprep.subr.bf16.mxu0 %v6000_v17  ;;  %5497 = vmatprep.subr.bf16.mxu1 %v6025_v21  ;;  %v210_v17 = vrot.slane %v193_v7, %v6805_v12 }
 0x11d   :  { %1681 = vmatmul.mubr.bf16.vlgmr.msra.gmra.mrb[4].mxu0 %v6787_v43  ;;  %1767 = vmatmul.mubr.bf16.vlgmr.msra.gmra.mrb[4].mxu1 %v6787_v43 }
 0x11e   :  { %2430 = vmatpush1.bf16.msra.mxu0 %v5998_v18  ;;  %5498 = vmatpush3.bf16.msra.mxu1 %v6026_v22 }
 0x11f   :  { %2431 = vmatprep.subr.bf16.mxu0 %v6003_v19  ;;  %5499 = vmatprep.subr.bf16.mxu1 %v6030_v24 }
 0x122   :  { %2432 = vmatpush1.bf16.msra.mxu0 %v6001_v20  ;;  %5500 = vmatpush3.bf16.msra.mxu1 %v6031_v25 }
 0x123   :  { %2433 = vmatprep.subr.bf16.mxu0 %v6006_v23  ;;  %5501 = vmatprep.subr.bf16.mxu1 %v6035_v27 }
 0x126   :  { %2434 = vmatpush1.bf16.msra.mxu0 %v6004_v26  ;;  %5502 = vmatpush3.bf16.msra.mxu1 %v6036_v31 }
 0x127   :  { %2435 = vmatprep.subr.bf16.mxu0 %v6009_v28  ;;  %5503 = vmatprep.subr.bf16.mxu1 %v6040_v32 }
 0x12a   :  { %2436 = vmatpush1.bf16.msra.mxu0 %v6007_v29  ;;  %5504 = vmatpush3.bf16.msra.mxu1 %v6041_v33 }
 0x12b   :  { %2437 = vmatprep.subr.bf16.mxu0 %v6012_v30  ;;  %5505 = vmatprep.subr.bf16.mxu1 %v6045_v35 }
 0x12e   :  { %2438 = vmatpush1.bf16.msra.mxu0 %v6010_v34  ;;  %5506 = vmatpush3.bf16.msra.mxu1 %v6046_v37 }
 0x12f   :  { %2439 = vmatprep.subr.bf16.mxu0 %v6015_v36  ;;  %5507 = vmatprep.subr.bf16.mxu1 %v6050_v39 }
 0x132   :  { %2440 = vmatpush1.bf16.msra.mxu0 %v6013_v38  ;;  %5508 = vmatpush3.bf16.msra.mxu1 %v6051_v41 }
 0x133   :  { %2441 = vmatprep.subr.bf16.mxu0 %v6018_v40  ;;  %5509 = vmatprep.subr.bf16.mxu1 %v6055_v60 }
 0x136   :  { %2442 = vmatpush1.bf16.msra.mxu0 %v6016_v42  ;;  %5510 = vmatpush3.bf16.msra.mxu1 %v6056_v62 }
 0x137   :  { %2443 = vmatprep.subr.bf16.mxu0 %v6021_v44  ;;  %5511 = vmatprep.subr.bf16.mxu1 %v6060_v0 }
 0x13a   :  { %2444 = vmatpush1.bf16.msra.mxu0 %v6019_v45  ;;  %5512 = vmatpush3.bf16.msra.mxu1 %v6061_v2 }
 0x13b   :  { %2445 = vmatprep.subr.bf16.mxu0 %v6024_v46  ;;  %5519 = vmatprep.subr.bf16.mxu1 %v6065_v4 }
 0x13e   :  { %2446 = vmatpush1.bf16.msra.mxu0 %v6022_v47  ;;  %v1103_v47 = vld [vmem:[#allocation9 + $0x4] sm:$0xf] }
 0x13f   :  { %2447 = vmatprep.subr.bf16.mxu0 %v6029_v48  ;;  %v1108_v48 = vrot.slane %v1103_v47, %v6799_v9 }
 0x142   :  { %2448 = vmatpush1.bf16.msra.mxu0 %v6027_v49  ;;  %v1116_v49 = vrot.slane %v1103_v47, %v6801_v10 }
 0x143   :  { %2449 = vmatprep.subr.bf16.mxu0 %v6034_v51  ;;  %v1112_v51 = vrot.slane %v1103_v47, %v6803_v11 }
 0x146   :  { %2450 = vmatpush1.bf16.msra.mxu0 %v6032_v52  ;;  %v1120_v52 = vrot.slane %v1103_v47, %v6805_v12  ;;  %v6090_v47 = vld [vmem:[#allocation10 + $0x5c0] ss:$12 sps:$4 sm:$0xff]  }
 0x147   :  { %2451 = vmatprep.subr.bf16.mxu0 %v6039_v53 }
 0x14a   :  { %2452 = vmatpush1.bf16.msra.mxu0 %v6037_v54 }
 0x14b   :  { %2453 = vmatprep.subr.bf16.mxu0 %v6044_v55 }
 0x14e   :  { %2454 = vmatpush1.bf16.msra.mxu0 %v6042_v56 }
 0x14f   :  { %2455 = vmatprep.subr.bf16.mxu0 %v6049_v57 }
 0x152   :  { %2456 = vmatpush1.bf16.msra.mxu0 %v6047_v58 }
 0x153   :  { %2457 = vmatprep.subr.bf16.mxu0 %v6054_v59 }
 0x156   :  { %2458 = vmatpush1.bf16.msra.mxu0 %v6052_v61 }
 0x157   :  { %2459 = vmatprep.subr.bf16.mxu0 %v6059_v63 }
 0x15a   :  { %2460 = vmatpush1.bf16.msra.mxu0 %v6057_v1 }
 0x15b   :  { %2472 = vmatprep.subr.bf16.mxu0 %v6064_v3 }
 0x190   :  { %v772_v18 = vpop.f32.mrb[0].mxu0  ;;  %v858_v19 = vpop.f32.mrb[0].mxu1 }
 0x191   :  { %v5629_v20 = vadd.f32 %v772_v18, %v198_v13  ;;  %v5633_v21 = vadd.f32 %v858_v19, %v206_v14  ;;  %v774_v22 = vpop.f32.mrb[1].mxu0  ;;  %v860_v23 = vpop.f32.mrb[1].mxu1 }
 0x192   :  { %v5630_v24 = vadd.f32 %v774_v22, %v202_v15  ;;  %v5634_v25 = vadd.f32 %v860_v23, %v210_v17  ;;  %v776_v26 = vpop.f32.mrb[2].mxu0  ;;  %v862_v27 = vpop.f32.mrb[2].mxu1  ;;  %v6062_v23 = vld [vmem:[#allocation10 + $0x480] ss:$12 sps:$4 sm:$0xff]  }
 0x193   :  { %v869_v28 = vmax.f32 %v5633_v21, 0.0  ;;  %v5631_v29 = vadd.f32 %v776_v26, %v198_v13  ;;  %v5635_v30 = vadd.f32 %v862_v27, %v206_v14  ;;  %v778_v31 = vpop.f32.mrb[3].mxu0  ;;  %v864_v32 = vpop.f32.mrb[3].mxu1  ;;  %v867_v35 = vmax.f32 %v5629_v20, 0.0  ;;  %v6070_v26 = vld [vmem:[#allocation10 + $0x560] ss:$12 sps:$4 sm:$0xff]  }
 0x194   :  { %v5632_v33 = vadd.f32 %v778_v31, %v202_v15  ;;  %v5636_v34 = vadd.f32 %v864_v32, %v210_v17  ;;  %v868_v38 = vmax.f32 %v5630_v24, 0.0  ;;  %v870_v39 = vmax.f32 %v5634_v25, 0.0  ;;  %v6066_v24 = vld [vmem:[#allocation10 + $0x488] ss:$12 sps:$4 sm:$0xff]   ;;  %v6067_v27 = vld [vmem:[#allocation10 + $0x498] ss:$12 sps:$4 sm:$0xff]  }
 0x195   :  { %v871_v36 = vmax.f32 %v5631_v29, 0.0  ;;  %v873_v37 = vmax.f32 %v5635_v30, 0.0  ;;  %v6069_v25 = vld [vmem:[#allocation10 + $0x49c] ss:$12 sps:$4 sm:$0xff]   ;;  %v6074_v29 = vld [vmem:[#allocation10 + $0x4b4] ss:$12 sps:$4 sm:$0xff]  }
 0x196   :  { %v872_v40 = vmax.f32 %v5632_v33, 0.0  ;;  %v874_v41 = vmax.f32 %v5636_v34, 0.0  ;;  %v6075_v30 = vld [vmem:[#allocation10 + $0x578] ss:$12 sps:$4 sm:$0xff]   ;;  %v6072_v31 = vld [vmem:[#allocation10 + $0x4b0] ss:$12 sps:$4 sm:$0xff]  }
 0x197   :  { %v6811_v42 = vpack.c.bf16 %v871_v36, %v867_v35  ;;  %v6813_v44 = vpack.c.bf16 %v873_v37, %v869_v28  ;;  %v6071_v28 = vld [vmem:[#allocation10 + $0x4a0] ss:$12 sps:$4 sm:$0xff]   ;;  %v6076_v32 = vld [vmem:[#allocation10 + $0x4b8] ss:$12 sps:$4 sm:$0xff]   ;;  %v6080_v34 = vld [vmem:[#allocation10 + $0x590] ss:$12 sps:$4 sm:$0xff]  }
 0x198   :  { %v6815_v45 = vpack.c.bf16 %v872_v40, %v868_v38  ;;  %v6817_v46 = vpack.c.bf16 %v874_v41, %v870_v39  ;;  %v6079_v33 = vld [vmem:[#allocation10 + $0x4cc] ss:$12 sps:$4 sm:$0xff]   ;;  %v6077_v35 = vld [vmem:[#allocation10 + $0x4c8] ss:$12 sps:$4 sm:$0xff]   ;;  %v6081_v36 = vld [vmem:[#allocation10 + $0x4d0] ss:$12 sps:$4 sm:$0xff]  }
 0x199   :  { %v6084_v37 = vld [vmem:[#allocation10 + $0x4e4] ss:$12 sps:$4 sm:$0xff]   ;;  %v6085_v38 = vld [vmem:[#allocation10 + $0x5a8] ss:$12 sps:$4 sm:$0xff]   ;;  %v6082_v39 = vld [vmem:[#allocation10 + $0x4e0] ss:$12 sps:$4 sm:$0xff]  }
 0x19a   :  { %v6086_v40 = vld [vmem:[#allocation10 + $0x4e8] ss:$12 sps:$4 sm:$0xff]  }
 0x19b   :  { %v6089_v41 = vld [vmem:[#allocation10 + $0x4fc] ss:$12 sps:$4 sm:$0xff]  }
 0x1f0   :  { %v1682_v53 = vpop.f32.mrb[4].mxu0  ;;  %v1768_v54 = vpop.f32.mrb[4].mxu1 }
 0x1f1   :  { %v5637_v55 = vadd.f32 %v1682_v53, %v1108_v48  ;;  %v5641_v56 = vadd.f32 %v1768_v54, %v1116_v49  ;;  %v1684_v57 = vpop.f32.mrb[5].mxu0  ;;  %v1770_v58 = vpop.f32.mrb[5].mxu1  ;;  %v6092_v53 = vld [vmem:[#allocation10 + $0x510] ss:$12 sps:$4 sm:$0xff]   ;;  %v6096_v54 = vld [vmem:[#allocation10 + $0x518] ss:$12 sps:$4 sm:$0xff]  }
 0x1f2   :  { %v5638_v59 = vadd.f32 %v1684_v57, %v1112_v51  ;;  %v5642_v60 = vadd.f32 %v1770_v58, %v1120_v52  ;;  %v1686_v61 = vpop.f32.mrb[6].mxu0  ;;  %v1772_v62 = vpop.f32.mrb[6].mxu1  ;;  %v6097_v57 = vld [vmem:[#allocation10 + $0x528] ss:$12 sps:$4 sm:$0xff]   ;;  %v6101_v58 = vld [vmem:[#allocation10 + $0x530] ss:$12 sps:$4 sm:$0xff]  }
 0x1f3   :  { %v1779_v63 = vmax.f32 %v5641_v56, 0.0  ;;  %v5639_v0 = vadd.f32 %v1686_v61, %v1108_v48  ;;  %v5643_v1 = vadd.f32 %v1772_v62, %v1116_v49  ;;  %v1688_v2 = vpop.f32.mrb[7].mxu0  ;;  %v1774_v3 = vpop.f32.mrb[7].mxu1  ;;  %v1777_v6 = vmax.f32 %v5637_v55, 0.0  ;;  %v6087_v48 = vld [vmem:[#allocation10 + $0x4f8] ss:$12 sps:$4 sm:$0xff]  }
 0x1f4   :  { %v5640_v4 = vadd.f32 %v1688_v2, %v1112_v51  ;;  %v5644_v5 = vadd.f32 %v1774_v3, %v1120_v52  ;;  %v1778_v14 = vmax.f32 %v5638_v59, 0.0  ;;  %v1780_v15 = vmax.f32 %v5642_v60, 0.0  ;;  %v6091_v49 = vld [vmem:[#allocation10 + $0x500] ss:$12 sps:$4 sm:$0xff]   ;;  %v6095_v52 = vld [vmem:[#allocation10 + $0x5d8] ss:$12 sps:$4 sm:$0xff]  }
 0x1f5   :  { %v1781_v7 = vmax.f32 %v5639_v0, 0.0  ;;  %v1783_v13 = vmax.f32 %v5643_v1, 0.0  ;;  %v6094_v51 = vld [vmem:[#allocation10 + $0x514] ss:$12 sps:$4 sm:$0xff]   ;;  %v6099_v55 = vld [vmem:[#allocation10 + $0x52c] ss:$12 sps:$4 sm:$0xff]  }
 0x1f6   :  { %v1782_v17 = vmax.f32 %v5640_v4, 0.0  ;;  %v1784_v18 = vmax.f32 %v5644_v5, 0.0  ;;  %v6100_v56 = vld [vmem:[#allocation10 + $0x5f0] ss:$12 sps:$4 sm:$0xff]   ;;  %v6105_v60 = vld [vmem:[#allocation10 + $0xc8] ss:$12 sps:$4 sm:$0xff]  }
 0x1f7   :  { %v1913_v19 = vpack.c.bf16 %v1781_v7, %v1777_v6  ;;  %v6823_v20 = vpack.c.bf16 %v1783_v13, %v1779_v63  ;;  %v6104_v59 = vld [vmem:[#allocation10 + $0x544] ss:$12 sps:$4 sm:$0xff]   ;;  %v6102_v61 = vld [vmem:[#allocation10 + $0x540] ss:$12 sps:$4 sm:$0xff]   ;;  %v6106_v62 = vld [vmem:[#allocation10 + $0x8] ss:$12 sps:$4 sm:$0xff]  }
 0x1f8   :  { %v1914_v21 = vpack.c.bf16 %v1782_v17, %v1778_v14  ;;  %v1916_v22 = vpack.c.bf16 %v1784_v18, %v1780_v15  ;;  %v6109_v63 = vld [vmem:[#allocation10 + $0x55c] ss:$12 sps:$4 sm:$0xff]   ;;  %v6110_v0 = vld [vmem:[#allocation10 + $0xe0] ss:$12 sps:$4 sm:$0xff]   ;;  %v6107_v1 = vld [vmem:[#allocation10 + $0x558] ss:$12 sps:$4 sm:$0xff]  }
 0x1f9   :  { %v6111_v2 = vld [vmem:[#allocation10 + $0x20] ss:$12 sps:$4 sm:$0xff]   ;;  %v6115_v4 = vld [vmem:[#allocation10 + $0xf8] ss:$12 sps:$4 sm:$0xff]   ;;  %v6112_v5 = vld [vmem:[#allocation10 + $0x570] ss:$12 sps:$4 sm:$0xff]  }
 0x1fa   :  { %2461 = vmatprep.mubr.bf16.mxu0 %v1914_v21  ;;  %2547 = vmatprep.mubr.bf16.mxu1 %v1914_v21  ;;  %v6114_v3 = vld [vmem:[#allocation10 + $0x574] ss:$12 sps:$4 sm:$0xff]   ;;  %v6116_v6 = vld [vmem:[#allocation10 + $0x38] ss:$12 sps:$4 sm:$0xff]   ;;  %v6120_v13 = vld [vmem:[#allocation10 + $0x110] ss:$12 sps:$4 sm:$0xff]  }
 0x1fb   :  { %2462 = vmatmul.mubr.bf16.vlgmr.msra.gmra.mrb[8].mxu0 %v1913_v19  ;;  %2548 = vmatmul.mubr.bf16.vlgmr.msra.gmra.mrb[8].mxu1 %v1913_v19  ;;  %v6119_v7 = vld [vmem:[#allocation10 + $0x58c] ss:$12 sps:$4 sm:$0xff]   ;;  %v6117_v14 = vld [vmem:[#allocation10 + $0x588] ss:$12 sps:$4 sm:$0xff]   ;;  %v6121_v15 = vld [vmem:[#allocation10 + $0x50] ss:$12 sps:$4 sm:$0xff]  }
 0x1fc   :  { %2473 = vmatpush1.bf16.msra.mxu0 %v6062_v23  ;;  %5520 = vmatpush3.bf16.msra.mxu1 %v6066_v24  ;;  %v6124_v17 = vld [vmem:[#allocation10 + $0x5a4] ss:$12 sps:$4 sm:$0xff]   ;;  %v6125_v18 = vld [vmem:[#allocation10 + $0x128] ss:$12 sps:$4 sm:$0xff]   ;;  %v6122_v19 = vld [vmem:[#allocation10 + $0x5a0] ss:$12 sps:$4 sm:$0xff]  }
 0x1fd   :  { %2504 = vmatprep.mubr.bf16.mxu0 %v1916_v22  ;;  %2588 = vmatprep.mubr.bf16.mxu1 %v1916_v22  ;;  %v6126_v21 = vld [vmem:[#allocation10 + $0x68] ss:$12 sps:$4 sm:$0xff]   ;;  %v6130_v23 = vld [vmem:[#allocation10 + $0x140] ss:$12 sps:$4 sm:$0xff]   ;;  %v6127_v24 = vld [vmem:[#allocation10 + $0x5b8] ss:$12 sps:$4 sm:$0xff]  }
 0x1fe   :  { %2474 = vmatprep.subr.bf16.mxu0 %v6069_v25  ;;  %5521 = vmatprep.subr.bf16.mxu1 %v6070_v26  ;;  %v6129_v22 = vld [vmem:[#allocation10 + $0x5bc] ss:$12 sps:$4 sm:$0xff]   ;;  %v6131_v25 = vld [vmem:[#allocation10 + $0x80] ss:$12 sps:$4 sm:$0xff]  }
 0x1ff   :  { %v6134_v26 = vld [vmem:[#allocation10 + $0x5d4] ss:$12 sps:$4 sm:$0xff]  }
 0x200   :  { %2475 = vmatpush1.bf16.msra.mxu0 %v6067_v27  ;;  %5522 = vmatpush3.bf16.msra.mxu1 %v6071_v28  ;;  %v6135_v27 = vld [vmem:[#allocation10 + $0x158] ss:$12 sps:$4 sm:$0xff]   ;;  %v6132_v28 = vld [vmem:[#allocation10 + $0x5d0] ss:$12 sps:$4 sm:$0xff]  }
 0x201   :  { %2476 = vmatprep.subr.bf16.mxu0 %v6074_v29  ;;  %5523 = vmatprep.subr.bf16.mxu1 %v6075_v30  ;;  %v6136_v29 = vld [vmem:[#allocation10 + $0x98] ss:$12 sps:$4 sm:$0xff]  }
 0x202   :  { %v6139_v30 = vld [vmem:[#allocation10 + $0x5ec] ss:$12 sps:$4 sm:$0xff]  }
 0x204   :  { %2477 = vmatpush1.bf16.msra.mxu0 %v6072_v31  ;;  %5524 = vmatpush3.bf16.msra.mxu1 %v6076_v32  ;;  %v6140_v31 = vld [vmem:[#allocation10 + $0x170] ss:$12 sps:$4 sm:$0xff]   ;;  %v6137_v32 = vld [vmem:[#allocation10 + $0x5e8] ss:$12 sps:$4 sm:$0xff]  }
 0x205   :  { %2478 = vmatprep.subr.bf16.mxu0 %v6079_v33  ;;  %5525 = vmatprep.subr.bf16.mxu1 %v6080_v34  ;;  %v6141_v33 = vld [vmem:[#allocation10 + $0xb0] ss:$12 sps:$4 sm:$0xff]  }
 0x206   :  { %v6144_v34 = vld [vmem:[#allocation10 + $0x4] ss:$12 sps:$4 sm:$0xff]  }
 0x208   :  { %2479 = vmatpush1.bf16.msra.mxu0 %v6077_v35  ;;  %5526 = vmatpush3.bf16.msra.mxu1 %v6081_v36  ;;  %v6145_v35 = vld [vmem:[#allocation10 + $0x248] ss:$12 sps:$4 sm:$0xff]   ;;  %v6142_v36 = vld [vmem:[#allocation10] ss:$12 sps:$4 sm:$0xff]  }
 0x209   :  { %2480 = vmatprep.subr.bf16.mxu0 %v6084_v37  ;;  %5527 = vmatprep.subr.bf16.mxu1 %v6085_v38  ;;  %v6146_v37 = vld [vmem:[#allocation10 + $0x188] ss:$12 sps:$4 sm:$0xff]  }
 0x20a   :  { %v6149_v38 = vld [vmem:[#allocation10 + $0x1c] ss:$12 sps:$4 sm:$0xff]  }
 0x20c   :  { %2481 = vmatpush1.bf16.msra.mxu0 %v6082_v39  ;;  %5528 = vmatpush3.bf16.msra.mxu1 %v6086_v40  ;;  %v6150_v39 = vld [vmem:[#allocation10 + $0x260] ss:$12 sps:$4 sm:$0xff]   ;;  %v6147_v40 = vld [vmem:[#allocation10 + $0x18] ss:$12 sps:$4 sm:$0xff]  }
 0x20d   :  { %2482 = vmatprep.subr.bf16.mxu0 %v6089_v41  ;;  %5529 = vmatprep.subr.bf16.mxu1 %v6090_v47  ;;  %v6151_v41 = vld [vmem:[#allocation10 + $0x1a0] ss:$12 sps:$4 sm:$0xff]  }
 0x20e   :  { %v6154_v47 = vld [vmem:[#allocation10 + $0x34] ss:$12 sps:$4 sm:$0xff]  }
 0x210   :  { %2483 = vmatpush1.bf16.msra.mxu0 %v6087_v48  ;;  %5530 = vmatpush3.bf16.msra.mxu1 %v6091_v49  ;;  %v6155_v48 = vld [vmem:[#allocation10 + $0x278] ss:$12 sps:$4 sm:$0xff]   ;;  %v6152_v49 = vld [vmem:[#allocation10 + $0x30] ss:$12 sps:$4 sm:$0xff]  }
 0x211   :  { %2484 = vmatprep.subr.bf16.mxu0 %v6094_v51  ;;  %5531 = vmatprep.subr.bf16.mxu1 %v6095_v52  ;;  %v6156_v51 = vld [vmem:[#allocation10 + $0x1b8] ss:$12 sps:$4 sm:$0xff]   ;;  %v6160_v52 = vld [vmem:[#allocation10 + $0x290] ss:$12 sps:$4 sm:$0xff]  }
 0x214   :  { %2485 = vmatpush1.bf16.msra.mxu0 %v6092_v53  ;;  %5532 = vmatpush3.bf16.msra.mxu1 %v6096_v54  ;;  %v6157_v53 = vld [vmem:[#allocation10 + $0x48] ss:$12 sps:$4 sm:$0xff]   ;;  %v6164_v54 = vld [vmem:[#allocation10 + $0x64] ss:$12 sps:$4 sm:$0xff]  }
 0x215   :  { %2486 = vmatprep.subr.bf16.mxu0 %v6099_v55  ;;  %5533 = vmatprep.subr.bf16.mxu1 %v6100_v56  ;;  %v6165_v55 = vld [vmem:[#allocation10 + $0x2a8] ss:$12 sps:$4 sm:$0xff]   ;;  %v6162_v56 = vld [vmem:[#allocation10 + $0x60] ss:$12 sps:$4 sm:$0xff]  }
 0x218   :  { %2487 = vmatpush1.bf16.msra.mxu0 %v6097_v57  ;;  %5534 = vmatpush3.bf16.msra.mxu1 %v6101_v58  ;;  %v6166_v57 = vld [vmem:[#allocation10 + $0x1e8] ss:$12 sps:$4 sm:$0xff]  }
 0x219   :  { %2488 = vmatprep.subr.bf16.mxu0 %v6104_v59  ;;  %5541 = vmatprep.subr.bf16.mxu1 %v6105_v60  ;;  %v6169_v58 = vld [vmem:[#allocation10 + $0x7c] ss:$12 sps:$4 sm:$0xff]   ;;  %v6170_v59 = vld [vmem:[#allocation10 + $0x2c0] ss:$12 sps:$4 sm:$0xff]   ;;  %v6167_v60 = vld [vmem:[#allocation10 + $0x78] ss:$12 sps:$4 sm:$0xff]  }
 0x21b   :  { %2589 = vmatmul.mubr.bf16.vlgmr.msra.gmra.mrb[12].mxu1 %v6823_v20 }
 0x21c   :  { %2489 = vmatpush1.bf16.msra.mxu0 %v6102_v61  ;;  %5542 = vmatpush3.bf16.msra.mxu1 %v6106_v62  ;;  %v6171_v61 = vld [vmem:[#allocation10 + $0x200] ss:$12 sps:$4 sm:$0xff]  }
 0x21d   :  { %3227 = vmatprep.mubr.bf16.mxu1 %v6815_v45  ;;  %2490 = vmatprep.subr.bf16.mxu0 %v6109_v63  ;;  %v6174_v62 = vld [vmem:[#allocation10 + $0x94] ss:$12 sps:$4 sm:$0xff]   ;;  %v6175_v63 = vld [vmem:[#allocation10 + $0x2d8] ss:$12 sps:$4 sm:$0xff]  }
 0x21e   :  { %5543 = vmatprep.subr.bf16.mxu1 %v6110_v0  ;;  %v6172_v0 = vld [vmem:[#allocation10 + $0x90] ss:$12 sps:$4 sm:$0xff]  }
 0x220   :  { %2491 = vmatpush1.bf16.msra.mxu0 %v6107_v1  ;;  %5544 = vmatpush3.bf16.msra.mxu1 %v6111_v2  ;;  %v6176_v1 = vld [vmem:[#allocation10 + $0x218] ss:$12 sps:$4 sm:$0xff]  }
 0x221   :  { %2492 = vmatprep.subr.bf16.mxu0 %v6114_v3  ;;  %5545 = vmatprep.subr.bf16.mxu1 %v6115_v4  ;;  %v6179_v2 = vld [vmem:[#allocation10 + $0xac] ss:$12 sps:$4 sm:$0xff]   ;;  %v6180_v3 = vld [vmem:[#allocation10 + $0x2f0] ss:$12 sps:$4 sm:$0xff]   ;;  %v6177_v4 = vld [vmem:[#allocation10 + $0xa8] ss:$12 sps:$4 sm:$0xff]  }
 0x224   :  { %2493 = vmatpush1.bf16.msra.mxu0 %v6112_v5  ;;  %5546 = vmatpush3.bf16.msra.mxu1 %v6116_v6  ;;  %v6181_v5 = vld [vmem:[#allocation10 + $0x230] ss:$12 sps:$4 sm:$0xff]  }
 0x225   :  { %2494 = vmatprep.subr.bf16.mxu0 %v6119_v7  ;;  %5547 = vmatprep.subr.bf16.mxu1 %v6120_v13  ;;  %v6184_v6 = vld [vmem:[#allocation10 + $0xc4] ss:$12 sps:$4 sm:$0xff]   ;;  %v6187_v7 = vld [vmem:[#allocation7 + $0x24] ss:$48 sps:$4 sm:$0xff]   ;;  %v6182_v13 = vld [vmem:[#allocation10 + $0xc0] ss:$12 sps:$4 sm:$0xff]  }
 0x228   :  { %2495 = vmatpush1.bf16.msra.mxu0 %v6117_v14  ;;  %5548 = vmatpush3.bf16.msra.mxu1 %v6121_v15  ;;  %v6185_v14 = vld [vmem:[#allocation7 + $0x20] ss:$48 sps:$4 sm:$0xff]   ;;  %v6190_v15 = vld [vmem:[#allocation10 + $0xdc] ss:$12 sps:$4 sm:$0xff]  }
 0x229   :  { %2496 = vmatprep.subr.bf16.mxu0 %v6124_v17  ;;  %5549 = vmatprep.subr.bf16.mxu1 %v6125_v18  ;;  %v6193_v17 = vld [vmem:[#allocation7 + $0x84] ss:$48 sps:$4 sm:$0xff]  }
 0x22a   :  { %v6188_v18 = vld [vmem:[#allocation10 + $0xd8] ss:$12 sps:$4 sm:$0xff]  }
 0x22c   :  { %2497 = vmatpush1.bf16.msra.mxu0 %v6122_v19  ;;  %5550 = vmatpush3.bf16.msra.mxu1 %v6126_v21  ;;  %v6191_v19 = vld [vmem:[#allocation7 + $0x80] ss:$48 sps:$4 sm:$0xff]  }
 0x22d   :  { %2498 = vmatprep.subr.bf16.mxu0 %v6129_v22  ;;  %5551 = vmatprep.subr.bf16.mxu1 %v6130_v23  ;;  %v6196_v21 = vld [vmem:[#allocation10 + $0xf4] ss:$12 sps:$4 sm:$0xff]   ;;  %v6199_v22 = vld [vmem:[#allocation7 + $0xe4] ss:$48 sps:$4 sm:$0xff]   ;;  %v6194_v23 = vld [vmem:[#allocation10 + $0xf0] ss:$12 sps:$4 sm:$0xff]  }
 0x230   :  { %2499 = vmatpush1.bf16.msra.mxu0 %v6127_v24  ;;  %5552 = vmatpush3.bf16.msra.mxu1 %v6131_v25  ;;  %v6197_v24 = vld [vmem:[#allocation7 + $0xe0] ss:$48 sps:$4 sm:$0xff]   ;;  %v6202_v25 = vld [vmem:[#allocation10 + $0x10c] ss:$12 sps:$4 sm:$0xff]  }
 0x231   :  { %2500 = vmatprep.subr.bf16.mxu0 %v6134_v26  ;;  %5553 = vmatprep.subr.bf16.mxu1 %v6135_v27  ;;  %v6205_v26 = vld [vmem:[#allocation7 + $0x144] ss:$48 sps:$4 sm:$0xff]  }
 0x232   :  { %v6200_v27 = vld [vmem:[#allocation10 + $0x108] ss:$12 sps:$4 sm:$0xff]  }
 0x234   :  { %2501 = vmatpush1.bf16.msra.mxu0 %v6132_v28  ;;  %5554 = vmatpush3.bf16.msra.mxu1 %v6136_v29  ;;  %v6203_v28 = vld [vmem:[#allocation7 + $0x140] ss:$48 sps:$4 sm:$0xff]  }
 0x235   :  { %2502 = vmatprep.subr.bf16.mxu0 %v6139_v30  ;;  %5555 = vmatprep.subr.bf16.mxu1 %v6140_v31  ;;  %v6208_v29 = vld [vmem:[#allocation10 + $0x124] ss:$12 sps:$4 sm:$0xff]   ;;  %v6211_v30 = vld [vmem:[#allocation7 + $0x1a4] ss:$48 sps:$4 sm:$0xff]   ;;  %v6206_v31 = vld [vmem:[#allocation10 + $0x120] ss:$12 sps:$4 sm:$0xff]  }
 0x238   :  { %2503 = vmatpush1.bf16.msra.mxu0 %v6137_v32  ;;  %5556 = vmatpush3.bf16.msra.mxu1 %v6141_v33  ;;  %v6209_v32 = vld [vmem:[#allocation7 + $0x1a0] ss:$48 sps:$4 sm:$0xff]   ;;  %v6214_v33 = vld [vmem:[#allocation10 + $0x13c] ss:$12 sps:$4 sm:$0xff]  }
 0x239   :  { %3109 = vmatprep.subr.bf16.mxu0 %v6144_v34  ;;  %5563 = vmatprep.subr.bf16.mxu1 %v6145_v35  ;;  %v6217_v34 = vld [vmem:[#allocation7 + $0x204] ss:$48 sps:$4 sm:$0xff]  }
 0x23a   :  { %v6212_v35 = vld [vmem:[#allocation10 + $0x138] ss:$12 sps:$4 sm:$0xff]  }
 0x23b   :  { %2505 = vmatmul.mubr.bf16.vlgmr.msra.gmra.mrb[8].mxu0 %v6823_v20  ;;  %3228 = vmatmul.mubr.bf16.vlgmr.msra.gmra.mrb[16].mxu1 %v6811_v42  ;;  %v6159_v20 = vld [vmem:[#allocation10 + $0x4c] ss:$12 sps:$4 sm:$0xff]  }
 0x23c   :  { %3110 = vmatpush1.bf16.msra.mxu0 %v6142_v36  ;;  %3141 = vmatprep.mubr.bf16.mxu0 %v6815_v45  ;;  %v6161_v45 = vld [vmem:[#allocation10 + $0x1d0] ss:$12 sps:$4 sm:$0xff]   ;;  %v6215_v36 = vld [vmem:[#allocation7 + $0x200] ss:$48 sps:$4 sm:$0xff]  }
 0x23d   :  { %5564 = vmatpush3.bf16.msra.mxu1 %v6146_v37  ;;  %3268 = vmatprep.mubr.bf16.mxu1 %v6817_v46  ;;  %v6220_v37 = vld [vmem:[#allocation10 + $0x154] ss:$12 sps:$4 sm:$0xff]  }
 0x23e   :  { %3111 = vmatprep.subr.bf16.mxu0 %v6149_v38  ;;  %5565 = vmatprep.subr.bf16.mxu1 %v6150_v39  ;;  %v6223_v38 = vld [vmem:[#allocation7 + $0x264] ss:$48 sps:$4 sm:$0xff]   ;;  %v6218_v39 = vld [vmem:[#allocation10 + $0x150] ss:$12 sps:$4 sm:$0xff]  }
 0x240   :  { %3112 = vmatpush1.bf16.msra.mxu0 %v6147_v40  ;;  %v6221_v40 = vld [vmem:[#allocation7 + $0x260] ss:$48 sps:$4 sm:$0xff]  }
 0x241   :  { %5566 = vmatpush3.bf16.msra.mxu1 %v6151_v41  ;;  %3113 = vmatprep.subr.bf16.mxu0 %v6154_v47  ;;  %v6226_v41 = vld [vmem:[#allocation10 + $0x16c] ss:$12 sps:$4 sm:$0xff]  }
 0x242   :  { %5567 = vmatprep.subr.bf16.mxu1 %v6155_v48  ;;  %v6229_v47 = vld [vmem:[#allocation7 + $0x2c4] ss:$48 sps:$4 sm:$0xff]  }
 0x243   :  { %v6224_v48 = vld [vmem:[#allocation10 + $0x168] ss:$12 sps:$4 sm:$0xff]  }
 0x244   :  { %3114 = vmatpush1.bf16.msra.mxu0 %v6152_v49  ;;  %v6227_v49 = vld [vmem:[#allocation7 + $0x2c0] ss:$48 sps:$4 sm:$0xff]  }
 0x245   :  { %5568 = vmatpush3.bf16.msra.mxu1 %v6156_v51  ;;  %3115 = vmatprep.subr.bf16.mxu0 %v6159_v20  ;;  %v6232_v51 = vld [vmem:[#allocation10 + $0x184] ss:$12 sps:$4 sm:$0xff]   ;;  %v6235_v20 = vld [vmem:[#allocation7 + $0x324] ss:$48 sps:$4 sm:$0xff]  }
 0x246   :  { %5569 = vmatprep.subr.bf16.mxu1 %v6160_v52  ;;  %v6230_v52 = vld [vmem:[#allocation10 + $0x180] ss:$12 sps:$4 sm:$0xff]  }
 0x248   :  { %3116 = vmatpush1.bf16.msra.mxu0 %v6157_v53  ;;  %v6233_v53 = vld [vmem:[#allocation7 + $0x320] ss:$48 sps:$4 sm:$0xff]  }
 0x249   :  { %5570 = vmatpush3.bf16.msra.mxu1 %v6161_v45  ;;  %3117 = vmatprep.subr.bf16.mxu0 %v6164_v54  ;;  %v6238_v45 = vld [vmem:[#allocation10 + $0x19c] ss:$12 sps:$4 sm:$0xff]  }
 0x24a   :  { %5571 = vmatprep.subr.bf16.mxu1 %v6165_v55  ;;  %v6241_v54 = vld [vmem:[#allocation7 + $0x384] ss:$48 sps:$4 sm:$0xff]  }
 0x24b   :  { %v6236_v55 = vld [vmem:[#allocation10 + $0x198] ss:$12 sps:$4 sm:$0xff]  }
 0x24c   :  { %3118 = vmatpush1.bf16.msra.mxu0 %v6162_v56  ;;  %v6239_v56 = vld [vmem:[#allocation7 + $0x380] ss:$48 sps:$4 sm:$0xff]  }
 0x24d   :  { %5572 = vmatpush3.bf16.msra.mxu1 %v6166_v57  ;;  %3119 = vmatprep.subr.bf16.mxu0 %v6169_v58  ;;  %v6244_v57 = vld [vmem:[#allocation10 + $0x1b4] ss:$12 sps:$4 sm:$0xff]   ;;  %v6247_v58 = vld [vmem:[#allocation7 + $0x3e4] ss:$48 sps:$4 sm:$0xff]  }
 0x24e   :  { %5573 = vmatprep.subr.bf16.mxu1 %v6170_v59  ;;  %v6242_v59 = vld [vmem:[#allocation10 + $0x1b0] ss:$12 sps:$4 sm:$0xff]  }
 0x250   :  { %3120 = vmatpush1.bf16.msra.mxu0 %v6167_v60  ;;  %v6245_v60 = vld [vmem:[#allocation7 + $0x3e0] ss:$48 sps:$4 sm:$0xff]  }
 0x251   :  { %5574 = vmatpush3.bf16.msra.mxu1 %v6171_v61  ;;  %3121 = vmatprep.subr.bf16.mxu0 %v6174_v62  ;;  %v6250_v61 = vld [vmem:[#allocation10 + $0x1cc] ss:$12 sps:$4 sm:$0xff]  }
 0x252   :  { %5575 = vmatprep.subr.bf16.mxu1 %v6175_v63  ;;  %v6253_v62 = vld [vmem:[#allocation7 + $0x444] ss:$48 sps:$4 sm:$0xff]   ;;  %v6256_v63 = vld [vmem:[#allocation10 + $0x1e4] ss:$12 sps:$4 sm:$0xff]  }
 0x254   :  { %3122 = vmatpush1.bf16.msra.mxu0 %v6172_v0  ;;  %v6259_v0 = vld [vmem:[#allocation7 + $0x4a4] ss:$48 sps:$4 sm:$0xff]  }
 0x255   :  { %5576 = vmatpush3.bf16.msra.mxu1 %v6176_v1  ;;  %3123 = vmatprep.subr.bf16.mxu0 %v6179_v2  ;;  %v6254_v1 = vld [vmem:[#allocation10 + $0x1e0] ss:$12 sps:$4 sm:$0xff]   ;;  %v6257_v2 = vld [vmem:[#allocation7 + $0x4a0] ss:$48 sps:$4 sm:$0xff]  }
 0x256   :  { %5577 = vmatprep.subr.bf16.mxu1 %v6180_v3  ;;  %v6262_v3 = vld [vmem:[#allocation10 + $0x1fc] ss:$12 sps:$4 sm:$0xff]  }
 0x258   :  { %3124 = vmatpush1.bf16.msra.mxu0 %v6177_v4  ;;  %v6265_v4 = vld [vmem:[#allocation7 + $0x504] ss:$48 sps:$4 sm:$0xff]  }
 0x259   :  { %5578 = vmatpush3.bf16.msra.mxu1 %v6181_v5  ;;  %3125 = vmatprep.subr.bf16.mxu0 %v6184_v6  ;;  %v6260_v5 = vld [vmem:[#allocation10 + $0x1f8] ss:$12 sps:$4 sm:$0xff]  }
 0x25a   :  { %3875 = vmatprep.subr.bf16.mxu1 %v6187_v7  ;;  %v6263_v6 = vld [vmem:[#allocation7 + $0x500] ss:$48 sps:$4 sm:$0xff]  }
 0x25b   :  { %v6268_v7 = vld [vmem:[#allocation10 + $0x214] ss:$12 sps:$4 sm:$0xff]  }
 0x25c   :  { %3269 = vmatmul.mubr.bf16.vlgmr.msra.gmra.mrb[20].mxu1 %v6813_v44  ;;  %3126 = vmatpush1.bf16.msra.mxu0 %v6182_v13  ;;  %v6271_v13 = vld [vmem:[#allocation7 + $0x564] ss:$48 sps:$4 sm:$0xff]  }
 0x25d   :  { %3876 = vmatpush1.bf16.msra.mxu1 %v6185_v14  ;;  %3127 = vmatprep.subr.bf16.mxu0 %v6190_v15  ;;  %v6266_v14 = vld [vmem:[#allocation10 + $0x210] ss:$12 sps:$4 sm:$0xff]   ;;  %v6269_v15 = vld [vmem:[#allocation7 + $0x560] ss:$48 sps:$4 sm:$0xff]  }
 0x25e   :  { %3877 = vmatprep.subr.bf16.mxu1 %v6193_v17  ;;  %3907 = vmatprep.mubr.bf16.mxu1 %v6777_v50  ;;  %v6274_v17 = vld [vmem:[#allocation10 + $0x22c] ss:$12 sps:$4 sm:$0xff]  }
 0x260   :  { %3128 = vmatpush1.bf16.msra.mxu0 %v6188_v18  ;;  %v6277_v18 = vld [vmem:[#allocation7 + $0x5c4] ss:$48 sps:$4 sm:$0xff]  }
 0x261   :  { %3878 = vmatpush1.bf16.msra.mxu1 %v6191_v19  ;;  %3129 = vmatprep.subr.bf16.mxu0 %v6196_v21  ;;  %v6272_v19 = vld [vmem:[#allocation10 + $0x228] ss:$12 sps:$4 sm:$0xff]  }
 0x262   :  { %3879 = vmatprep.subr.bf16.mxu1 %v6199_v22  ;;  %v6275_v21 = vld [vmem:[#allocation7 + $0x5c0] ss:$48 sps:$4 sm:$0xff]  }
 0x263   :  { %v6280_v22 = vld [vmem:[#allocation10 + $0x244] ss:$12 sps:$4 sm:$0xff]  }
 0x264   :  { %3130 = vmatpush1.bf16.msra.mxu0 %v6194_v23  ;;  %v6283_v23 = vld [vmem:[#allocation7 + $0x624] ss:$48 sps:$4 sm:$0xff]  }
 0x265   :  { %3880 = vmatpush1.bf16.msra.mxu1 %v6197_v24  ;;  %3131 = vmatprep.subr.bf16.mxu0 %v6202_v25  ;;  %v6278_v24 = vld [vmem:[#allocation10 + $0x240] ss:$12 sps:$4 sm:$0xff]   ;;  %v6281_v25 = vld [vmem:[#allocation7 + $0x620] ss:$48 sps:$4 sm:$0xff]  }
 0x266   :  { %3881 = vmatprep.subr.bf16.mxu1 %v6205_v26  ;;  %v6286_v26 = vld [vmem:[#allocation10 + $0x25c] ss:$12 sps:$4 sm:$0xff]  }
 0x268   :  { %3132 = vmatpush1.bf16.msra.mxu0 %v6200_v27  ;;  %v6289_v27 = vld [vmem:[#allocation7 + $0x684] ss:$48 sps:$4 sm:$0xff]  }
 0x269   :  { %3882 = vmatpush1.bf16.msra.mxu1 %v6203_v28  ;;  %3133 = vmatprep.subr.bf16.mxu0 %v6208_v29  ;;  %v6284_v28 = vld [vmem:[#allocation10 + $0x258] ss:$12 sps:$4 sm:$0xff]  }
 0x26a   :  { %3883 = vmatprep.subr.bf16.mxu1 %v6211_v30  ;;  %v6287_v29 = vld [vmem:[#allocation7 + $0x680] ss:$48 sps:$4 sm:$0xff]  }
 0x26b   :  { %v6292_v30 = vld [vmem:[#allocation10 + $0x274] ss:$12 sps:$4 sm:$0xff]  }
 0x26c   :  { %3134 = vmatpush1.bf16.msra.mxu0 %v6206_v31  ;;  %v6295_v31 = vld [vmem:[#allocation7 + $0x6e4] ss:$48 sps:$4 sm:$0xff]  }
 0x26d   :  { %3884 = vmatpush1.bf16.msra.mxu1 %v6209_v32  ;;  %3135 = vmatprep.subr.bf16.mxu0 %v6214_v33  ;;  %v6290_v32 = vld [vmem:[#allocation10 + $0x270] ss:$12 sps:$4 sm:$0xff]   ;;  %v6293_v33 = vld [vmem:[#allocation7 + $0x6e0] ss:$48 sps:$4 sm:$0xff]  }
 0x26e   :  { %3885 = vmatprep.subr.bf16.mxu1 %v6217_v34  ;;  %v6298_v34 = vld [vmem:[#allocation10 + $0x28c] ss:$12 sps:$4 sm:$0xff]  }
 0x270   :  { %3136 = vmatpush1.bf16.msra.mxu0 %v6212_v35  ;;  %v6301_v35 = vld [vmem:[#allocation7 + $0x744] ss:$48 sps:$4 sm:$0xff]  }
 0x271   :  { %3886 = vmatpush1.bf16.msra.mxu1 %v6215_v36  ;;  %3137 = vmatprep.subr.bf16.mxu0 %v6220_v37  ;;  %v6296_v36 = vld [vmem:[#allocation10 + $0x288] ss:$12 sps:$4 sm:$0xff]  }
 0x272   :  { %3887 = vmatprep.subr.bf16.mxu1 %v6223_v38  ;;  %v6299_v37 = vld [vmem:[#allocation7 + $0x740] ss:$48 sps:$4 sm:$0xff]  }
 0x273   :  { %v6304_v38 = vld [vmem:[#allocation10 + $0x2a4] ss:$12 sps:$4 sm:$0xff]  }
 0x274   :  { %3138 = vmatpush1.bf16.msra.mxu0 %v6218_v39  ;;  %v6307_v39 = vld [vmem:[#allocation7 + $0x7a4] ss:$48 sps:$4 sm:$0xff]  }
 0x275   :  { %3888 = vmatpush1.bf16.msra.mxu1 %v6221_v40  ;;  %3139 = vmatprep.subr.bf16.mxu0 %v6226_v41  ;;  %v6302_v40 = vld [vmem:[#allocation10 + $0x2a0] ss:$12 sps:$4 sm:$0xff]   ;;  %v6305_v41 = vld [vmem:[#allocation7 + $0x7a0] ss:$48 sps:$4 sm:$0xff]  }
 0x276   :  { %3889 = vmatprep.subr.bf16.mxu1 %v6229_v47  ;;  %v6310_v47 = vld [vmem:[#allocation10 + $0x2bc] ss:$12 sps:$4 sm:$0xff]  }
 0x278   :  { %3140 = vmatpush1.bf16.msra.mxu0 %v6224_v48  ;;  %v6313_v48 = vld [vmem:[#allocation7 + $0x804] ss:$48 sps:$4 sm:$0xff]  }
 0x279   :  { %3890 = vmatpush1.bf16.msra.mxu1 %v6227_v49  ;;  %3152 = vmatprep.subr.bf16.mxu0 %v6232_v51  ;;  %v6308_v49 = vld [vmem:[#allocation10 + $0x2b8] ss:$12 sps:$4 sm:$0xff]  }
 0x27a   :  { %3891 = vmatprep.subr.bf16.mxu1 %v6235_v20  ;;  %v6311_v51 = vld [vmem:[#allocation7 + $0x800] ss:$48 sps:$4 sm:$0xff]  }
 0x27b   :  { %3142 = vmatmul.mubr.bf16.vlgmr.msra.gmra.mrb[8].mxu0 %v6811_v42  ;;  %v6248_v42 = vld [vmem:[#allocation10 + $0x1c8] ss:$12 sps:$4 sm:$0xff]  }
 0x27c   :  { %3153 = vmatpush1.bf16.msra.mxu0 %v6230_v52  ;;  %3184 = vmatprep.mubr.bf16.mxu0 %v6817_v46  ;;  %v6251_v46 = vld [vmem:[#allocation7 + $0x440] ss:$48 sps:$4 sm:$0xff]   ;;  %v6319_v52 = vld [vmem:[#allocation7 + $0x864] ss:$48 sps:$4 sm:$0xff]  }
 0x27d   :  { %3892 = vmatpush1.bf16.msra.mxu1 %v6233_v53  ;;  %3154 = vmatprep.subr.bf16.mxu0 %v6238_v45  ;;  %v6316_v20 = vld [vmem:[#allocation10 + $0x2d4] ss:$12 sps:$4 sm:$0xff]   ;;  %v6314_v53 = vld [vmem:[#allocation10 + $0x2d0] ss:$12 sps:$4 sm:$0xff]  }
 0x27e   :  { %3893 = vmatprep.subr.bf16.mxu1 %v6241_v54  ;;  %v6317_v45 = vld [vmem:[#allocation7 + $0x860] ss:$48 sps:$4 sm:$0xff]   ;;  %v6322_v54 = vld [vmem:[#allocation10 + $0x2ec] ss:$12 sps:$4 sm:$0xff]  }
 0x280   :  { %3155 = vmatpush1.bf16.msra.mxu0 %v6236_v55  ;;  %v6325_v55 = vld [vmem:[#allocation7 + $0x8c4] ss:$48 sps:$4 sm:$0xff]  }
 0x281   :  { %3894 = vmatpush1.bf16.msra.mxu1 %v6239_v56  ;;  %3156 = vmatprep.subr.bf16.mxu0 %v6244_v57  ;;  %v6320_v56 = vld [vmem:[#allocation10 + $0x2e8] ss:$12 sps:$4 sm:$0xff]  }
 0x282   :  { %3895 = vmatprep.subr.bf16.mxu1 %v6247_v58  ;;  %v6323_v57 = vld [vmem:[#allocation7 + $0x8c0] ss:$48 sps:$4 sm:$0xff]  }
 0x283   :  { %v6400_v58 = vld [vmem:[#allocation10 + $0x604] ss:$12 sps:$4 sm:$0xff]  }
 0x284   :  { %3157 = vmatpush1.bf16.msra.mxu0 %v6242_v59  ;;  %v6328_v59 = vld [vmem:[#allocation7 + $0x2c] ss:$48 sps:$4 sm:$0xff]  }
 0x285   :  { %3896 = vmatpush1.bf16.msra.mxu1 %v6245_v60  ;;  %3158 = vmatprep.subr.bf16.mxu0 %v6250_v61  ;;  %v6398_v60 = vld [vmem:[#allocation10 + $0x600] ss:$12 sps:$4 sm:$0xff]  }
 0x286   :  { %3897 = vmatprep.subr.bf16.mxu1 %v6253_v62  ;;  %v6326_v61 = vld [vmem:[#allocation7 + $0x28] ss:$48 sps:$4 sm:$0xff]   ;;  %v6331_v62 = vld [vmem:[#allocation7 + $0x8c] ss:$48 sps:$4 sm:$0xff]  }
 0x288   :  { %3159 = vmatpush1.bf16.msra.mxu0 %v6248_v42  ;;  %v6403_v42 = vld [vmem:[#allocation10 + $0x61c] ss:$12 sps:$4 sm:$0xff]  }
 0x289   :  { %3898 = vmatpush1.bf16.msra.mxu1 %v6251_v46  ;;  %3160 = vmatprep.subr.bf16.mxu0 %v6256_v63  ;;  %v6401_v46 = vld [vmem:[#allocation10 + $0x618] ss:$12 sps:$4 sm:$0xff]   ;;  %v6329_v63 = vld [vmem:[#allocation7 + $0x88] ss:$48 sps:$4 sm:$0xff]  }
 0x28a   :  { %3899 = vmatprep.subr.bf16.mxu1 %v6259_v0  ;;  %v6406_v0 = vld [vmem:[#allocation10 + $0x634] ss:$12 sps:$4 sm:$0xff]  }
 0x28c   :  { %3161 = vmatpush1.bf16.msra.mxu0 %v6254_v1  ;;  %v6334_v1 = vld [vmem:[#allocation7 + $0xec] ss:$48 sps:$4 sm:$0xff]  }
 0x28d   :  { %3900 = vmatpush1.bf16.msra.mxu1 %v6257_v2  ;;  %3162 = vmatprep.subr.bf16.mxu0 %v6262_v3  ;;  %v6404_v2 = vld [vmem:[#allocation10 + $0x630] ss:$12 sps:$4 sm:$0xff]  }
 0x28e   :  { %3901 = vmatprep.subr.bf16.mxu1 %v6265_v4  ;;  %v6332_v3 = vld [vmem:[#allocation7 + $0xe8] ss:$48 sps:$4 sm:$0xff]  }
 0x28f   :  { %v6409_v4 = vld [vmem:[#allocation10 + $0x64c] ss:$12 sps:$4 sm:$0xff]  }
 0x290   :  { %3163 = vmatpush1.bf16.msra.mxu0 %v6260_v5  ;;  %v6407_v5 = vld [vmem:[#allocation10 + $0x648] ss:$12 sps:$4 sm:$0xff]  }
 0x291   :  { %3902 = vmatpush1.bf16.msra.mxu1 %v6263_v6  ;;  %3164 = vmatprep.subr.bf16.mxu0 %v6268_v7  ;;  %v6335_v6 = vld [vmem:[#allocation7 + $0x148] ss:$48 sps:$4 sm:$0xff]   ;;  %v6412_v7 = vld [vmem:[#allocation10 + $0x664] ss:$12 sps:$4 sm:$0xff]  }
 0x292   :  { %3903 = vmatprep.subr.bf16.mxu1 %v6271_v13  ;;  %v6410_v13 = vld [vmem:[#allocation10 + $0x660] ss:$12 sps:$4 sm:$0xff]  }
 0x294   :  { %3165 = vmatpush1.bf16.msra.mxu0 %v6266_v14  ;;  %v6338_v14 = vld [vmem:[#allocation7 + $0x1a8] ss:$48 sps:$4 sm:$0xff]  }
 0x295   :  { %3904 = vmatpush1.bf16.msra.mxu1 %v6269_v15  ;;  %3166 = vmatprep.subr.bf16.mxu0 %v6274_v17  ;;  %v6415_v15 = vld [vmem:[#allocation10 + $0x67c] ss:$12 sps:$4 sm:$0xff]   ;;  %v6343_v17 = vld [vmem:[#allocation7 + $0x20c] ss:$48 sps:$4 sm:$0xff]  }
 0x296   :  { %3905 = vmatprep.subr.bf16.mxu1 %v6277_v18  ;;  %v6413_v18 = vld [vmem:[#allocation10 + $0x678] ss:$12 sps:$4 sm:$0xff]  }
 0x298   :  { %3167 = vmatpush1.bf16.msra.mxu0 %v6272_v19  ;;  %v6341_v19 = vld [vmem:[#allocation7 + $0x208] ss:$48 sps:$4 sm:$0xff]  }
 0x299   :  { %3906 = vmatpush1.bf16.msra.mxu1 %v6275_v21  ;;  %3168 = vmatprep.subr.bf16.mxu0 %v6280_v22  ;;  %v6418_v21 = vld [vmem:[#allocation10 + $0x694] ss:$12 sps:$4 sm:$0xff]  }
 0x29a   :  { %3918 = vmatprep.subr.bf16.mxu1 %v6283_v23  ;;  %v6346_v23 = vld [vmem:[#allocation7 + $0x26c] ss:$48 sps:$4 sm:$0xff]  }
 0x29c   :  { %3169 = vmatpush1.bf16.msra.mxu0 %v6278_v24  ;;  %3908 = vmatmul.mubr.bf16.vlgmr.msra.gmra.mrb[24].mxu1 %v6781_v8 }
 0x29d   :  { %3919 = vmatpush1.bf16.msra.mxu1 %v6281_v25  ;;  %3170 = vmatprep.subr.bf16.mxu0 %v6286_v26 }
 0x29e   :  { %3920 = vmatprep.subr.bf16.mxu1 %v6289_v27  ;;  %3950 = vmatprep.mubr.bf16.mxu1 %v6677_v16  ;;  %v6416_v27 = vld [vmem:[#allocation10 + $0x690] ss:$12 sps:$4 sm:$0xff]  }
 0x2a0   :  { %3171 = vmatpush1.bf16.msra.mxu0 %v6284_v28 }
 0x2a1   :  { %3921 = vmatpush1.bf16.msra.mxu1 %v6287_v29  ;;  %3172 = vmatprep.subr.bf16.mxu0 %v6292_v30  ;;  %v6344_v29 = vld [vmem:[#allocation7 + $0x268] ss:$48 sps:$4 sm:$0xff]  }
 0x2a2   :  { %3922 = vmatprep.subr.bf16.mxu1 %v6295_v31  ;;  %v6421_v30 = vld [vmem:[#allocation10 + $0x6ac] ss:$12 sps:$4 sm:$0xff]  }
 0x2a4   :  { %3173 = vmatpush1.bf16.msra.mxu0 %v6290_v32  ;;  %v6349_v32 = vld [vmem:[#allocation7 + $0x2cc] ss:$48 sps:$4 sm:$0xff]  }
 0x2a5   :  { %3923 = vmatpush1.bf16.msra.mxu1 %v6293_v33  ;;  %3174 = vmatprep.subr.bf16.mxu0 %v6298_v34  ;;  %v6419_v33 = vld [vmem:[#allocation10 + $0x6a8] ss:$12 sps:$4 sm:$0xff]   ;;  %v6347_v34 = vld [vmem:[#allocation7 + $0x2c8] ss:$48 sps:$4 sm:$0xff]  }
 0x2a6   :  { %3924 = vmatprep.subr.bf16.mxu1 %v6301_v35  ;;  %v6424_v35 = vld [vmem:[#allocation10 + $0x6c4] ss:$12 sps:$4 sm:$0xff]  }
 0x2a8   :  { %3175 = vmatpush1.bf16.msra.mxu0 %v6296_v36  ;;  %v6352_v36 = vld [vmem:[#allocation7 + $0x32c] ss:$48 sps:$4 sm:$0xff]  }
 0x2a9   :  { %3925 = vmatpush1.bf16.msra.mxu1 %v6299_v37  ;;  %3176 = vmatprep.subr.bf16.mxu0 %v6304_v38  ;;  %v6422_v37 = vld [vmem:[#allocation10 + $0x6c0] ss:$12 sps:$4 sm:$0xff]  }
 0x2aa   :  { %3926 = vmatprep.subr.bf16.mxu1 %v6307_v39  ;;  %v6350_v38 = vld [vmem:[#allocation7 + $0x328] ss:$48 sps:$4 sm:$0xff]  }
 0x2ab   :  { %v6429_v39 = vld [vmem:[#allocation10 + $0x6dc] ss:$12 sps:$4 sm:$0xff]  }
 0x2ac   :  { %3177 = vmatpush1.bf16.msra.mxu0 %v6302_v40  ;;  %v6355_v40 = vld [vmem:[#allocation7 + $0x38c] ss:$48 sps:$4 sm:$0xff]  }
 0x2ad   :  { %3927 = vmatpush1.bf16.msra.mxu1 %v6305_v41  ;;  %3178 = vmatprep.subr.bf16.mxu0 %v6310_v47  ;;  %v6427_v41 = vld [vmem:[#allocation10 + $0x6d8] ss:$12 sps:$4 sm:$0xff]   ;;  %v6353_v47 = vld [vmem:[#allocation7 + $0x388] ss:$48 sps:$4 sm:$0xff]  }
 0x2ae   :  { %3928 = vmatprep.subr.bf16.mxu1 %v6313_v48  ;;  %v6434_v48 = vld [vmem:[#allocation10 + $0x6f4] ss:$12 sps:$4 sm:$0xff]  }
 0x2b0   :  { %3179 = vmatpush1.bf16.msra.mxu0 %v6308_v49  ;;  %v6358_v49 = vld [vmem:[#allocation7 + $0x3ec] ss:$48 sps:$4 sm:$0xff]  }
 0x2b1   :  { %3929 = vmatpush1.bf16.msra.mxu1 %v6311_v51  ;;  %3180 = vmatprep.subr.bf16.mxu0 %v6316_v20  ;;  %v6432_v51 = vld [vmem:[#allocation10 + $0x6f0] ss:$12 sps:$4 sm:$0xff]  }
 0x2b2   :  { %3930 = vmatprep.subr.bf16.mxu1 %v6319_v52  ;;  %v6356_v20 = vld [vmem:[#allocation7 + $0x3e8] ss:$48 sps:$4 sm:$0xff]  }
 0x2b3   :  { %v6439_v52 = vld [vmem:[#allocation10 + $0x70c] ss:$12 sps:$4 sm:$0xff]  }
 0x2b4   :  { %3181 = vmatpush1.bf16.msra.mxu0 %v6314_v53  ;;  %v6361_v53 = vld [vmem:[#allocation7 + $0x44c] ss:$48 sps:$4 sm:$0xff]  }
 0x2b5   :  { %3931 = vmatpush1.bf16.msra.mxu1 %v6317_v45  ;;  %3182 = vmatprep.subr.bf16.mxu0 %v6322_v54  ;;  %v6437_v45 = vld [vmem:[#allocation10 + $0x708] ss:$12 sps:$4 sm:$0xff]   ;;  %v6359_v54 = vld [vmem:[#allocation7 + $0x448] ss:$48 sps:$4 sm:$0xff]  }
 0x2b6   :  { %3932 = vmatprep.subr.bf16.mxu1 %v6325_v55  ;;  %v6444_v55 = vld [vmem:[#allocation10 + $0x724] ss:$12 sps:$4 sm:$0xff]  }
 0x2b8   :  { %3183 = vmatpush1.bf16.msra.mxu0 %v6320_v56  ;;  %v6364_v56 = vld [vmem:[#allocation7 + $0x4ac] ss:$48 sps:$4 sm:$0xff]  }
 0x2b9   :  { %3933 = vmatpush1.bf16.msra.mxu1 %v6323_v57  ;;  %4699 = vmatprep.subr.bf16.mxu0 %v6400_v58  ;;  %v6442_v57 = vld [vmem:[#allocation10 + $0x720] ss:$12 sps:$4 sm:$0xff]  }
 0x2ba   :  { %3961 = vmatprep.subr.bf16.mxu1 %v6328_v59  ;;  %v6362_v58 = vld [vmem:[#allocation7 + $0x4a8] ss:$48 sps:$4 sm:$0xff]  }
 0x2bb   :  { %3185 = vmatmul.mubr.bf16.vlgmr.msra.gmra.mrb[8].mxu0 %v6813_v44  ;;  %v6337_v44 = vld [vmem:[#allocation7 + $0x14c] ss:$48 sps:$4 sm:$0xff]   ;;  %v6449_v59 = vld [vmem:[#allocation10 + $0x73c] ss:$12 sps:$4 sm:$0xff]  }
 0x2bc   :  { %3951 = vmatmul.mubr.bf16.vlgmr.msra.gmra.mrb[24].mxu1 %v6787_v43  ;;  %4700 = vmatpush1.bf16.msra.mxu0 %v6398_v60  ;;  %v6367_v60 = vld [vmem:[#allocation7 + $0x50c] ss:$48 sps:$4 sm:$0xff]  }
 0x2bd   :  { %3962 = vmatpush1.bf16.msra.mxu1 %v6326_v61  ;;  %3993 = vmatprep.mubr.bf16.mxu1 %v6777_v50  ;;  %v6340_v50 = vld [vmem:[#allocation7 + $0x1ac] ss:$48 sps:$4 sm:$0xff]   ;;  %v6447_v61 = vld [vmem:[#allocation10 + $0x738] ss:$12 sps:$4 sm:$0xff]  }
 0x2be   :  { %3963 = vmatprep.subr.bf16.mxu1 %v6331_v62  ;;  %4701 = vmatprep.subr.bf16.mxu0 %v6403_v42  ;;  %v6365_v62 = vld [vmem:[#allocation7 + $0x508] ss:$48 sps:$4 sm:$0xff]  }
 0x2c0   :  { %4702 = vmatpush1.bf16.msra.mxu0 %v6401_v46  ;;  %v6370_v46 = vld [vmem:[#allocation7 + $0x56c] ss:$48 sps:$4 sm:$0xff]  }
 0x2c1   :  { %3964 = vmatpush1.bf16.msra.mxu1 %v6329_v63  ;;  %4703 = vmatprep.subr.bf16.mxu0 %v6406_v0 }
 0x2c2   :  { %3965 = vmatprep.subr.bf16.mxu1 %v6334_v1 }
 0x2c4   :  { %4704 = vmatpush1.bf16.msra.mxu0 %v6404_v2 }
 0x2c5   :  { %3966 = vmatpush1.bf16.msra.mxu1 %v6332_v3  ;;  %4705 = vmatprep.subr.bf16.mxu0 %v6409_v4  ;;  %v6368_v3 = vld [vmem:[#allocation7 + $0x568] ss:$48 sps:$4 sm:$0xff]  }
 0x2c6   :  { %3967 = vmatprep.subr.bf16.mxu1 %v6337_v44 }
 0x2c8   :  { %4706 = vmatpush1.bf16.msra.mxu0 %v6407_v5  ;;  %v6373_v5 = vld [vmem:[#allocation7 + $0x5cc] ss:$48 sps:$4 sm:$0xff]  }
 0x2c9   :  { %3968 = vmatpush1.bf16.msra.mxu1 %v6335_v6  ;;  %4707 = vmatprep.subr.bf16.mxu0 %v6412_v7  ;;  %v6371_v7 = vld [vmem:[#allocation7 + $0x5c8] ss:$48 sps:$4 sm:$0xff]  }
 0x2ca   :  { %3969 = vmatprep.subr.bf16.mxu1 %v6340_v50  ;;  %v6376_v50 = vld [vmem:[#allocation7 + $0x62c] ss:$48 sps:$4 sm:$0xff]  }
 0x2cc   :  { %4708 = vmatpush1.bf16.msra.mxu0 %v6410_v13  ;;  %v6374_v13 = vld [vmem:[#allocation7 + $0x628] ss:$48 sps:$4 sm:$0xff]  }
 0x2cd   :  { %3970 = vmatpush1.bf16.msra.mxu1 %v6338_v14  ;;  %4709 = vmatprep.subr.bf16.mxu0 %v6415_v15  ;;  %v6379_v14 = vld [vmem:[#allocation7 + $0x68c] ss:$48 sps:$4 sm:$0xff]   ;;  %v6377_v15 = vld [vmem:[#allocation7 + $0x688] ss:$48 sps:$4 sm:$0xff]  }
 0x2ce   :  { %v5513_v22 = vpop.f32.mrb[8].mxu1  ;;  %3971 = vmatprep.subr.bf16.mxu1 %v6343_v17  ;;  %v6382_v17 = vld [vmem:[#allocation7 + $0x6ec] ss:$48 sps:$4 sm:$0xff]  }
 0x2cf   :  { %v5514_v24 = vpop.f32.mrb[9].mxu1 }
 0x2d0   :  { %v6840_v25 = vadd.f32 %v5514_v24, %v5513_v22  ;;  %v5516_v26 = vpop.f32.mrb[10].mxu1  ;;  %4710 = vmatpush1.bf16.msra.mxu0 %v6413_v18  ;;  %v6380_v18 = vld [vmem:[#allocation7 + $0x6e8] ss:$48 sps:$4 sm:$0xff]   ;;  %v6388_v22 = vld [vmem:[#allocation7 + $0x7ac] ss:$48 sps:$4 sm:$0xff]  }
 0x2d1   :  { %3972 = vmatpush1.bf16.msra.mxu1 %v6341_v19  ;;  %v5517_v28 = vpop.f32.mrb[11].mxu1  ;;  %4711 = vmatprep.subr.bf16.mxu0 %v6418_v21  ;;  %v6385_v19 = vld [vmem:[#allocation7 + $0x74c] ss:$48 sps:$4 sm:$0xff]   ;;  %v6383_v21 = vld [vmem:[#allocation7 + $0x748] ss:$48 sps:$4 sm:$0xff]  }
 0x2d2   :  { %v6842_v31 = vadd.f32 %v5517_v28, %v5516_v26  ;;  %3973 = vmatprep.subr.bf16.mxu1 %v6346_v23  ;;  %v6386_v23 = vld [vmem:[#allocation7 + $0x7a8] ss:$48 sps:$4 sm:$0xff]   ;;  %v6391_v24 = vld [vmem:[#allocation7 + $0x80c] ss:$48 sps:$4 sm:$0xff]  }
 0x2d3   :  { %v6394_v26 = vld [vmem:[#allocation7 + $0x86c] ss:$48 sps:$4 sm:$0xff]  }
 0x2d4   :  { %4712 = vmatpush1.bf16.msra.mxu0 %v6416_v27 }
 0x2d5   :  { %3974 = vmatpush1.bf16.msra.mxu1 %v6344_v29  ;;  %4713 = vmatprep.subr.bf16.mxu0 %v6421_v30  ;;  %v6454_v29 = vld [vmem:[#allocation10 + $0x754] ss:$12 sps:$4 sm:$0xff]  }
 0x2d6   :  { %3975 = vmatprep.subr.bf16.mxu1 %v6349_v32  ;;  %v6452_v32 = vld [vmem:[#allocation10 + $0x750] ss:$12 sps:$4 sm:$0xff]  }
 0x2d8   :  { %4714 = vmatpush1.bf16.msra.mxu0 %v6419_v33 }
 0x2d9   :  { %3976 = vmatpush1.bf16.msra.mxu1 %v6347_v34  ;;  %4715 = vmatprep.subr.bf16.mxu0 %v6424_v35  ;;  %v6397_v35 = vld [vmem:[#allocation7 + $0x8cc] ss:$48 sps:$4 sm:$0xff]  }
 0x2da   :  { %3977 = vmatprep.subr.bf16.mxu1 %v6352_v36 }
 0x2dc   :  { %4716 = vmatpush1.bf16.msra.mxu0 %v6422_v37  ;;  %v6459_v37 = vld [vmem:[#allocation10 + $0x76c] ss:$12 sps:$4 sm:$0xff]  }
 0x2dd   :  { %3978 = vmatpush1.bf16.msra.mxu1 %v6350_v38  ;;  %4717 = vmatprep.subr.bf16.mxu0 %v6429_v39  ;;  %v6395_v38 = vld [vmem:[#allocation7 + $0x8c8] ss:$48 sps:$4 sm:$0xff]   ;;  %v6457_v39 = vld [vmem:[#allocation10 + $0x768] ss:$12 sps:$4 sm:$0xff]  }
 0x2de   :  { %3979 = vmatprep.subr.bf16.mxu1 %v6355_v40  ;;  %v6425_v40 = vld [vmem:[#allocation10 + $0x6c8] ss:$12 sps:$4 sm:$0xff]  }
 0x2e0   :  { %4718 = vmatpush1.bf16.msra.mxu0 %v6427_v41  ;;  %v6426_v41 = vld [vmem:[#allocation10 + $0x608] ss:$12 sps:$4 sm:$0xff]  }
 0x2e1   :  { %3980 = vmatpush1.bf16.msra.mxu1 %v6353_v47  ;;  %4719 = vmatprep.subr.bf16.mxu0 %v6434_v48  ;;  %v6430_v47 = vld [vmem:[#allocation10 + $0x6e0] ss:$12 sps:$4 sm:$0xff]   ;;  %v6464_v48 = vld [vmem:[#allocation10 + $0x784] ss:$12 sps:$4 sm:$0xff]  }
 0x2e2   :  { %3981 = vmatprep.subr.bf16.mxu1 %v6358_v49  ;;  %v6431_v49 = vld [vmem:[#allocation10 + $0x620] ss:$12 sps:$4 sm:$0xff]  }
 0x2e4   :  { %4720 = vmatpush1.bf16.msra.mxu0 %v6432_v51  ;;  %v6435_v51 = vld [vmem:[#allocation10 + $0x6f8] ss:$12 sps:$4 sm:$0xff]  }
 0x2e5   :  { %3982 = vmatpush1.bf16.msra.mxu1 %v6356_v20  ;;  %4721 = vmatprep.subr.bf16.mxu0 %v6439_v52  ;;  %v6436_v20 = vld [vmem:[#allocation10 + $0x638] ss:$12 sps:$4 sm:$0xff]   ;;  %v6440_v52 = vld [vmem:[#allocation10 + $0x710] ss:$12 sps:$4 sm:$0xff]  }
 0x2e6   :  { %3983 = vmatprep.subr.bf16.mxu1 %v6361_v53  ;;  %v6441_v53 = vld [vmem:[#allocation10 + $0x650] ss:$12 sps:$4 sm:$0xff]  }
 0x2e8   :  { %4722 = vmatpush1.bf16.msra.mxu0 %v6437_v45  ;;  %v6445_v45 = vld [vmem:[#allocation10 + $0x728] ss:$12 sps:$4 sm:$0xff]  }
 0x2e9   :  { %3984 = vmatpush1.bf16.msra.mxu1 %v6359_v54  ;;  %4723 = vmatprep.subr.bf16.mxu0 %v6444_v55  ;;  %v6446_v54 = vld [vmem:[#allocation10 + $0x668] ss:$12 sps:$4 sm:$0xff]   ;;  %v6450_v55 = vld [vmem:[#allocation10 + $0x740] ss:$12 sps:$4 sm:$0xff]  }
 0x2ea   :  { %3985 = vmatprep.subr.bf16.mxu1 %v6364_v56  ;;  %v6451_v56 = vld [vmem:[#allocation10 + $0x680] ss:$12 sps:$4 sm:$0xff]  }
 0x2ec   :  { %4724 = vmatpush1.bf16.msra.mxu0 %v6442_v57 }
 0x2ed   :  { %3986 = vmatpush1.bf16.msra.mxu1 %v6362_v58  ;;  %4725 = vmatprep.subr.bf16.mxu0 %v6449_v59 }
 0x2ee   :  { %v5535_v42 = vpop.f32.mrb[12].mxu1  ;;  %3987 = vmatprep.subr.bf16.mxu1 %v6367_v60 }
 0x2ef   :  { %v5536_v63 = vpop.f32.mrb[13].mxu1 }
 0x2f0   :  { %v5537_v0 = vadd.f32 %v5536_v63, %v5535_v42  ;;  %v5538_v1 = vpop.f32.mrb[14].mxu1  ;;  %4726 = vmatpush1.bf16.msra.mxu0 %v6447_v61  ;;  %v6456_v61 = vld [vmem:[#allocation10 + $0x698] ss:$12 sps:$4 sm:$0xff]   ;;  %v6460_v42 = vld [vmem:[#allocation10 + $0x770] ss:$12 sps:$4 sm:$0xff]  }
 0x2f1   :  { %3988 = vmatpush1.bf16.msra.mxu1 %v6365_v62  ;;  %v5539_v2 = vpop.f32.mrb[15].mxu1  ;;  %4727 = vmatprep.subr.bf16.mxu0 %v6454_v29  ;;  %v6470_v29 = vld [vmem:[#allocation10 + $0x7b4] ss:$12 sps:$4 sm:$0xff]  }
 0x2f2   :  { %v2591_v4 = vadd.f32 %v5537_v0, %v6840_v25  ;;  %v5540_v44 = vadd.f32 %v5539_v2, %v5538_v1  ;;  %3989 = vmatprep.subr.bf16.mxu1 %v6370_v46  ;;  %v6461_v1 = vld [vmem:[#allocation10 + $0x6b0] ss:$12 sps:$4 sm:$0xff]   ;;  %v6489_v2 = vld [vmem:[#allocation10 + $0x848] ss:$12 sps:$4 sm:$0xff]  }
 0x2f4   :  { %v2594_v6 = vadd.f32 %v5540_v44, %v6842_v31  ;;  %v6392_v31 = vld [vmem:[#allocation7 + $0x868] ss:$48 sps:$4 sm:$0xff]   ;;  %4728 = vmatpush1.bf16.msra.mxu0 %v6452_v32  ;;  %v6500_v32 = vld [vmem:[#allocation10 + $0x7b8] ss:$12 sps:$4 sm:$0xff]  }
 0x2f5   :  { %3990 = vmatpush1.bf16.msra.mxu1 %v6368_v3  ;;  %4729 = vmatprep.subr.bf16.mxu0 %v6459_v37  ;;  %v6853_v3 = vld [vmem:[#allocation9 + $0x8] sm:$0xf]  ;;  %v6476_v37 = vld [vmem:[#allocation10 + $0x7e4] ss:$12 sps:$4 sm:$0xff]  }
 0x2f6   :  { %3991 = vmatprep.subr.bf16.mxu1 %v6373_v5  ;;  %v3382_v44 = vrot.slane %v6853_v3, %v6803_v11 }
 0x2f8   :  { %4730 = vmatpush1.bf16.msra.mxu0 %v6457_v39  ;;  %v6474_v39 = vld [vmem:[#allocation10 + $0x7e0] ss:$12 sps:$4 sm:$0xff]  }
 0x2f9   :  { %3992 = vmatpush1.bf16.msra.mxu1 %v6371_v7  ;;  %4742 = vmatprep.subr.bf16.mxu0 %v6464_v48  ;;  %v6477_v48 = vld [vmem:[#allocation10 + $0x7f8] ss:$12 sps:$4 sm:$0xff]  }
 0x2fa   :  { %4004 = vmatprep.subr.bf16.mxu1 %v6376_v50 }
 0x2fc   :  { %3994 = vmatmul.mubr.bf16.vlgmr.msra.gmra.mrb[28].mxu1 %v6781_v8  ;;  %v6389_v8 = vld [vmem:[#allocation7 + $0x808] ss:$48 sps:$4 sm:$0xff]  }
 0x2fd   :  { %4005 = vmatpush1.bf16.msra.mxu1 %v6374_v13  ;;  %4036 = vmatprep.mubr.bf16.mxu1 %v6677_v16 }
 0x2fe   :  { %4006 = vmatprep.subr.bf16.mxu1 %v6379_v14 }
 0x301   :  { %4007 = vmatpush1.bf16.msra.mxu1 %v6377_v15 }
 0x302   :  { %4008 = vmatprep.subr.bf16.mxu1 %v6382_v17 }
 0x305   :  { %4009 = vmatpush1.bf16.msra.mxu1 %v6380_v18 }
 0x306   :  { %4010 = vmatprep.subr.bf16.mxu1 %v6385_v19 }
 0x309   :  { %4011 = vmatpush1.bf16.msra.mxu1 %v6383_v21 }
 0x30a   :  { %4012 = vmatprep.subr.bf16.mxu1 %v6388_v22 }
 0x30d   :  { %4013 = vmatpush1.bf16.msra.mxu1 %v6386_v23 }
 0x30e   :  { %v5557_v25 = vpop.f32.mrb[16].mxu1  ;;  %4014 = vmatprep.subr.bf16.mxu1 %v6391_v24 }
 0x30f   :  { %v5558_v16 = vpop.f32.mrb[17].mxu1 }
 0x310   :  { %v5559_v27 = vadd.f32 %v5558_v16, %v5557_v25  ;;  %v5560_v28 = vpop.f32.mrb[18].mxu1  ;;  %v6490_v25 = vld [vmem:[#allocation10 + $0x788] ss:$12 sps:$4 sm:$0xff]   ;;  %v6494_v16 = vld [vmem:[#allocation10 + $0x860] ss:$12 sps:$4 sm:$0xff]  }
 0x311   :  { %4015 = vmatpush1.bf16.msra.mxu1 %v6389_v8  ;;  %v5561_v30 = vpop.f32.mrb[19].mxu1  ;;  %v6462_v8 = vld [vmem:[#allocation10 + $0x780] ss:$12 sps:$4 sm:$0xff]  }
 0x312   :  { %v3230_v33 = vadd.f32 %v5559_v27, %v2591_v4  ;;  %v5562_v34 = vadd.f32 %v5561_v30, %v5560_v28  ;;  %4016 = vmatprep.subr.bf16.mxu1 %v6394_v26  ;;  %v3378_v4 = vrot.slane %v6853_v3, %v6799_v9  ;;  %v6467_v26 = vld [vmem:[#allocation10 + $0x79c] ss:$12 sps:$4 sm:$0xff]   ;;  %v6465_v27 = vld [vmem:[#allocation10 + $0x798] ss:$12 sps:$4 sm:$0xff]   ;;  %v6495_v28 = vld [vmem:[#allocation10 + $0x7a0] ss:$12 sps:$4 sm:$0xff]  }
 0x313   :  { %v6499_v30 = vld [vmem:[#allocation10 + $0x878] ss:$12 sps:$4 sm:$0xff]  }
 0x314   :  { %v3233_v36 = vadd.f32 %v5562_v34, %v2594_v6  ;;  %v6504_v34 = vld [vmem:[#allocation10 + $0x890] ss:$12 sps:$4 sm:$0xff]  }
 0x315   :  { %4017 = vmatpush1.bf16.msra.mxu1 %v6392_v31  ;;  %v6468_v31 = vld [vmem:[#allocation10 + $0x7b0] ss:$12 sps:$4 sm:$0xff]  }
 0x316   :  { %4018 = vmatprep.subr.bf16.mxu1 %v6397_v35  ;;  %v6471_v35 = vld [vmem:[#allocation10 + $0x7c8] ss:$12 sps:$4 sm:$0xff]  }
 0x319   :  { %4019 = vmatpush1.bf16.msra.mxu1 %v6395_v38  ;;  %v6509_v38 = vld [vmem:[#allocation10 + $0x8a8] ss:$12 sps:$4 sm:$0xff]  }
 0x31a   :  { %5585 = vmatprep.subr.bf16.mxu1 %v6425_v40  ;;  %v6510_v40 = vld [vmem:[#allocation10 + $0x7e8] ss:$12 sps:$4 sm:$0xff]  }
 0x31c   :  { %4037 = vmatmul.mubr.bf16.vlgmr.msra.gmra.mrb[28].mxu1 %v6787_v43  ;;  %v6455_v43 = vld [vmem:[#allocation10 + $0x758] ss:$12 sps:$4 sm:$0xff]  }
 0x31d   :  { %5586 = vmatpush3.bf16.msra.mxu1 %v6426_v41  ;;  %v6479_v41 = vld [vmem:[#allocation10 + $0x7fc] ss:$12 sps:$4 sm:$0xff]  }
 0x31e   :  { %5587 = vmatprep.subr.bf16.mxu1 %v6430_v47  ;;  %v6514_v47 = vld [vmem:[#allocation10 + $0x8c0] ss:$12 sps:$4 sm:$0xff]  }
 0x321   :  { %5588 = vmatpush3.bf16.msra.mxu1 %v6431_v49  ;;  %v6515_v49 = vld [vmem:[#allocation10 + $0x800] ss:$12 sps:$4 sm:$0xff]  }
 0x322   :  { %5589 = vmatprep.subr.bf16.mxu1 %v6435_v51  ;;  %v6482_v51 = vld [vmem:[#allocation10 + $0x814] ss:$12 sps:$4 sm:$0xff]  }
 0x325   :  { %5590 = vmatpush3.bf16.msra.mxu1 %v6436_v20  ;;  %v6519_v20 = vld [vmem:[#allocation10 + $0x8d8] ss:$12 sps:$4 sm:$0xff]  }
 0x326   :  { %5591 = vmatprep.subr.bf16.mxu1 %v6440_v52  ;;  %v6480_v52 = vld [vmem:[#allocation10 + $0x810] ss:$12 sps:$4 sm:$0xff]  }
 0x329   :  { %5592 = vmatpush3.bf16.msra.mxu1 %v6441_v53  ;;  %v6520_v53 = vld [vmem:[#allocation10 + $0x818] ss:$12 sps:$4 sm:$0xff]  }
 0x32a   :  { %5593 = vmatprep.subr.bf16.mxu1 %v6445_v45  ;;  %v6485_v45 = vld [vmem:[#allocation10 + $0x82c] ss:$12 sps:$4 sm:$0xff]  }
 0x32d   :  { %5594 = vmatpush3.bf16.msra.mxu1 %v6446_v54  ;;  %v6524_v54 = vld [vmem:[#allocation10 + $0x8f0] ss:$12 sps:$4 sm:$0xff]  }
 0x32e   :  { %5595 = vmatprep.subr.bf16.mxu1 %v6450_v55  ;;  %v6483_v55 = vld [vmem:[#allocation10 + $0x828] ss:$12 sps:$4 sm:$0xff]  }
 0x32f   :  { %v5579_v57 = vpop.f32.mrb[20].mxu1 }
 0x330   :  { %v5580_v58 = vpop.f32.mrb[21].mxu1 }
 0x331   :  { %v5581_v59 = vadd.f32 %v5580_v58, %v5579_v57  ;;  %v5582_v60 = vpop.f32.mrb[22].mxu1  ;;  %5596 = vmatpush3.bf16.msra.mxu1 %v6451_v56  ;;  %v6525_v56 = vld [vmem:[#allocation10 + $0x830] ss:$12 sps:$4 sm:$0xff]   ;;  %v6486_v57 = vld [vmem:[#allocation10 + $0x840] ss:$12 sps:$4 sm:$0xff]  }
 0x332   :  { %v5583_v62 = vpop.f32.mrb[23].mxu1  ;;  %5597 = vmatprep.subr.bf16.mxu1 %v6455_v43  ;;  %v6488_v43 = vld [vmem:[#allocation10 + $0x844] ss:$12 sps:$4 sm:$0xff]   ;;  %v6493_v58 = vld [vmem:[#allocation10 + $0x85c] ss:$12 sps:$4 sm:$0xff]  }
 0x333   :  { %v6849_v46 = vadd.f32 %v5581_v59, %v3230_v33  ;;  %v5584_v63 = vadd.f32 %v5583_v62, %v5582_v60  ;;  %v6473_v33 = vld [vmem:[#allocation10 + $0x7cc] ss:$12 sps:$4 sm:$0xff]   ;;  %v6498_v60 = vld [vmem:[#allocation10 + $0x874] ss:$12 sps:$4 sm:$0xff]  }
 0x334   :  { %v6491_v59 = vld [vmem:[#allocation10 + $0x858] ss:$12 sps:$4 sm:$0xff]  }
 0x335   :  { %v6851_v0 = vadd.f32 %v5584_v63, %v3233_v36  ;;  %5598 = vmatpush3.bf16.msra.mxu1 %v6456_v61  ;;  %v6505_v36 = vld [vmem:[#allocation10 + $0x7d0] ss:$12 sps:$4 sm:$0xff]   ;;  %v6503_v62 = vld [vmem:[#allocation10 + $0x88c] ss:$12 sps:$4 sm:$0xff]  }
 0x336   :  { %5599 = vmatprep.subr.bf16.mxu1 %v6460_v42  ;;  %v6496_v61 = vld [vmem:[#allocation10 + $0x870] ss:$12 sps:$4 sm:$0xff]   ;;  %v6501_v42 = vld [vmem:[#allocation10 + $0x888] ss:$12 sps:$4 sm:$0xff]  }
 0x337   :  { %v6508_v63 = vld [vmem:[#allocation10 + $0x8a4] ss:$12 sps:$4 sm:$0xff]  }
 0x339   :  { %5600 = vmatpush3.bf16.msra.mxu1 %v6461_v1  ;;  %v6506_v1 = vld [vmem:[#allocation10 + $0x8a0] ss:$12 sps:$4 sm:$0xff]  }
 0x33a   :  { %5607 = vmatprep.subr.bf16.mxu1 %v6489_v2  ;;  %v6513_v2 = vld [vmem:[#allocation10 + $0x8bc] ss:$12 sps:$4 sm:$0xff]  }
 0x38f   :  { %v3952_v5 = vpop.f32.mrb[24].mxu1 }
 0x390   :  { %v5645_v6 = vadd.f32 %v3952_v5, %v3378_v4  ;;  %v3954_v7 = vpop.f32.mrb[25].mxu1  ;;  %v6516_v5 = vld [vmem:[#allocation10 + $0x8d0] ss:$12 sps:$4 sm:$0xff]  }
 0x391   :  { %v5646_v50 = vadd.f32 %v3954_v7, %v3382_v44  ;;  %v3956_v13 = vpop.f32.mrb[26].mxu1  ;;  %v6521_v7 = vld [vmem:[#allocation10 + $0x8e8] ss:$12 sps:$4 sm:$0xff]  }
 0x392   :  { %v5647_v14 = vadd.f32 %v3956_v13, %v3378_v4  ;;  %v3958_v15 = vpop.f32.mrb[27].mxu1  ;;  %v4047_v18 = vmax.f32 %v5645_v6, 0.0  ;;  %v6511_v4 = vld [vmem:[#allocation10 + $0x8b8] ss:$12 sps:$4 sm:$0xff]   ;;  %v3390_v13 = vrot.slane %v6853_v3, %v6805_v12 }
 0x393   :  { %v5648_v17 = vadd.f32 %v3958_v15, %v3382_v44  ;;  %v4048_v21 = vmax.f32 %v5646_v50, 0.0  ;;  %v6518_v44 = vld [vmem:[#allocation10 + $0x8d4] ss:$12 sps:$4 sm:$0xff]   ;;  %v6523_v6 = vld [vmem:[#allocation10 + $0x8ec] ss:$12 sps:$4 sm:$0xff]   ;;  %v3386_v50 = vrot.slane %v6853_v3, %v6801_v10 }
 0x394   :  { %v4051_v19 = vmax.f32 %v5647_v14, 0.0 }
 0x395   :  { %v4052_v22 = vmax.f32 %v5648_v17, 0.0 }
 0x396   :  { %v4183_v23 = vpack.c.bf16 %v4051_v19, %v4047_v18 }
 0x397   :  { %v4184_v24 = vpack.c.bf16 %v4052_v22, %v4048_v21 }
 0x399   :  { %4731 = vmatprep.mubr.bf16.mxu0 %v4184_v24  ;;  %4817 = vmatprep.mubr.bf16.mxu1 %v4184_v24 }
 0x39a   :  { %4732 = vmatmul.mubr.bf16.vlgmr.msra.gmra.mrb[8].mxu0 %v4183_v23  ;;  %4818 = vmatmul.mubr.bf16.vlgmr.msra.gmra.mrb[32].mxu1 %v4183_v23 }
 0x39b   :  { %4743 = vmatpush1.bf16.msra.mxu0 %v6462_v8  ;;  %5608 = vmatpush3.bf16.msra.mxu1 %v6490_v25 }
 0x39c   :  { %4744 = vmatprep.subr.bf16.mxu0 %v6467_v26  ;;  %5609 = vmatprep.subr.bf16.mxu1 %v6494_v16 }
 0x39f   :  { %4745 = vmatpush1.bf16.msra.mxu0 %v6465_v27  ;;  %5610 = vmatpush3.bf16.msra.mxu1 %v6495_v28 }
 0x3a0   :  { %4746 = vmatprep.subr.bf16.mxu0 %v6470_v29  ;;  %5611 = vmatprep.subr.bf16.mxu1 %v6499_v30 }
 0x3a3   :  { %4747 = vmatpush1.bf16.msra.mxu0 %v6468_v31  ;;  %5612 = vmatpush3.bf16.msra.mxu1 %v6500_v32  ;;  %v4873_v32 = vld [vmem:[#allocation12] sm:$0x7] }
 0x3a4   :  { %4748 = vmatprep.subr.bf16.mxu0 %v6473_v33  ;;  %5613 = vmatprep.subr.bf16.mxu1 %v6504_v34  ;;  %v4878_v33 = vrot.slane %v4873_v32, %v6799_v9  ;;  %v4882_v34 = vrot.slane %v4873_v32, %v6803_v11 }
 0x3a7   :  { %4749 = vmatpush1.bf16.msra.mxu0 %v6471_v35  ;;  %5614 = vmatpush3.bf16.msra.mxu1 %v6505_v36 }
 0x3a8   :  { %4750 = vmatprep.subr.bf16.mxu0 %v6476_v37  ;;  %5615 = vmatprep.subr.bf16.mxu1 %v6509_v38 }
 0x3ab   :  { %4751 = vmatpush1.bf16.msra.mxu0 %v6474_v39  ;;  %5616 = vmatpush3.bf16.msra.mxu1 %v6510_v40 }
 0x3ac   :  { %4752 = vmatprep.subr.bf16.mxu0 %v6479_v41  ;;  %5617 = vmatprep.subr.bf16.mxu1 %v6514_v47 }
 0x3af   :  { %4753 = vmatpush1.bf16.msra.mxu0 %v6477_v48  ;;  %5618 = vmatpush3.bf16.msra.mxu1 %v6515_v49 }
 0x3b0   :  { %4754 = vmatprep.subr.bf16.mxu0 %v6482_v51  ;;  %5619 = vmatprep.subr.bf16.mxu1 %v6519_v20 }
 0x3b3   :  { %4755 = vmatpush1.bf16.msra.mxu0 %v6480_v52  ;;  %5620 = vmatpush3.bf16.msra.mxu1 %v6520_v53  ;;  %v4886_v52 = vrot.slane %v4873_v32, %v6801_v10 }
 0x3b4   :  { %4756 = vmatprep.subr.bf16.mxu0 %v6485_v45  ;;  %5621 = vmatprep.subr.bf16.mxu1 %v6524_v54 }
 0x3b7   :  { %4757 = vmatpush1.bf16.msra.mxu0 %v6483_v55  ;;  %5622 = vmatpush3.bf16.msra.mxu1 %v6525_v56 }
 0x3b8   :  { %4758 = vmatprep.subr.bf16.mxu0 %v6488_v43 }
 0x3bb   :  { %4759 = vmatpush1.bf16.msra.mxu0 %v6486_v57 }
 0x3bc   :  { %4760 = vmatprep.subr.bf16.mxu0 %v6493_v58 }
 0x3bf   :  { %4761 = vmatpush1.bf16.msra.mxu0 %v6491_v59 }
 0x3c0   :  { %4762 = vmatprep.subr.bf16.mxu0 %v6498_v60 }
 0x3c3   :  { %4763 = vmatpush1.bf16.msra.mxu0 %v6496_v61 }
 0x3c4   :  { %4764 = vmatprep.subr.bf16.mxu0 %v6503_v62 }
 0x3c7   :  { %4765 = vmatpush1.bf16.msra.mxu0 %v6501_v42 }
 0x3c8   :  { %4766 = vmatprep.subr.bf16.mxu0 %v6508_v63 }
 0x3cb   :  { %4767 = vmatpush1.bf16.msra.mxu0 %v6506_v1 }
 0x3cc   :  { %4768 = vmatprep.subr.bf16.mxu0 %v6513_v2 }
 0x3cf   :  { %4769 = vmatpush1.bf16.msra.mxu0 %v6511_v4 }
 0x3d0   :  { %4770 = vmatprep.subr.bf16.mxu0 %v6518_v44 }
 0x3d3   :  { %4771 = vmatpush1.bf16.msra.mxu0 %v6516_v5 }
 0x3d4   :  { %4772 = vmatprep.subr.bf16.mxu0 %v6523_v6 }
 0x3d7   :  { %4773 = vmatpush1.bf16.msra.mxu0 %v6521_v7 }
 0x3ef   :  { %v4038_v14 = vpop.f32.mrb[28].mxu1 }
 0x3f0   :  { %v5649_v15 = vadd.f32 %v4038_v14, %v3386_v50  ;;  %v4040_v17 = vpop.f32.mrb[29].mxu1 }
 0x3f1   :  { %v5650_v18 = vadd.f32 %v4040_v17, %v3390_v13  ;;  %v4042_v19 = vpop.f32.mrb[30].mxu1 }
 0x3f2   :  { %v5651_v21 = vadd.f32 %v4042_v19, %v3386_v50  ;;  %v4044_v22 = vpop.f32.mrb[31].mxu1  ;;  %v4049_v24 = vmax.f32 %v5649_v15, 0.0 }
 0x3f3   :  { %v5652_v23 = vadd.f32 %v4044_v22, %v3390_v13  ;;  %v4050_v25 = vmax.f32 %v5650_v18, 0.0 }
 0x3f4   :  { %v4053_v8 = vmax.f32 %v5651_v21, 0.0 }
 0x3f5   :  { %v4054_v26 = vmax.f32 %v5652_v23, 0.0 }
 0x3f6   :  { %v4185_v16 = vpack.c.bf16 %v4053_v8, %v4049_v24 }
 0x3f7   :  { %v4186_v27 = vpack.c.bf16 %v4054_v26, %v4050_v25 }
 0x3f9   :  { %4774 = vmatprep.mubr.bf16.mxu0 %v4186_v27  ;;  %4858 = vmatprep.mubr.bf16.mxu1 %v4186_v27 }
 0x3fa   :  { %4775 = vmatmul.mubr.bf16.vlgmr.msra.gmra.mrb[8].mxu0 %v4185_v16  ;;  %4859 = vmatmul.mubr.bf16.vlgmr.msra.gmra.mrb[36].mxu1 %v4185_v16 }
 0x46d   :  { %v5601_v28 = vpop.f32.mrb[32].mxu1 }
 0x46e   :  { %v5602_v12 = vpop.f32.mrb[33].mxu1 }
 0x46f   :  { %v5603_v3 = vadd.f32 %v5602_v12, %v5601_v28  ;;  %v5604_v29 = vpop.f32.mrb[34].mxu1 }
 0x470   :  { %v5605_v30 = vpop.f32.mrb[35].mxu1 }
 0x471   :  { %v5606_v31 = vadd.f32 %v5605_v30, %v5604_v29 }
 0x4cd   :  { %v4776_v35 = vpop.f32.mrb[8].mxu0  ;;  %v5623_v36 = vpop.f32.mrb[36].mxu1 }
 0x4ce   :  { %v4890_v37 = vadd.f32 %v4878_v33, %v4776_v35  ;;  %v4778_v38 = vpop.f32.mrb[9].mxu0  ;;  %v5624_v39 = vpop.f32.mrb[37].mxu1 }
 0x4cf   :  { %v4891_v40 = vadd.f32 %v4882_v34, %v4778_v38  ;;  %v5625_v41 = vadd.f32 %v5624_v39, %v5623_v36  ;;  %v4780_v47 = vpop.f32.mrb[10].mxu0  ;;  %v5626_v48 = vpop.f32.mrb[38].mxu1 }
 0x4d0   :  { %4896 = vst [vmem:[#allocation13] sm:$0xff] %v4890_v37  ;;  %v4893_v49 = vadd.f32 %v4878_v33, %v4780_v47  ;;  %v4782_v51 = vpop.f32.mrb[11].mxu0  ;;  %v5627_v20 = vpop.f32.mrb[39].mxu1 }
 0x4d1   :  { %4897 = vst [vmem:[#allocation13 + $0x8] sm:$0xff] %v4891_v40  ;;  %v4861_v53 = vadd.f32 %v5625_v41, %v5603_v3  ;;  %v4894_v9 = vadd.f32 %v4882_v34, %v4782_v51  ;;  %v5628_v45 = vadd.f32 %v5627_v20, %v5626_v48 }
 0x4d2   :  { %4899 = vst [vmem:[#allocation13 + $0x18] sm:$0xff] %v4893_v49 }
 0x4d3   :  { %v4869_v11 = vadd.f32 %v4861_v53, %v6849_v46  ;;  %4900 = vst [vmem:[#allocation13 + $0x20] sm:$0xff] %v4894_v9  ;;  %v4864_v54 = vadd.f32 %v5628_v45, %v5606_v31 }
 0x4d5   :  { %v4892_v55 = vadd.f32 %v4886_v52, %v4869_v11  ;;  %v4872_v56 = vadd.f32 %v4864_v54, %v6851_v0 }
 0x4d7   :  { %4898 = vst [vmem:[#allocation13 + $0x10] sm:$0xff] %v4892_v55  ;;  %v4895_v43 = vadd.f32 %v4886_v52, %v4872_v56 }
 0x4d9   :  { %4901 = vst [vmem:[#allocation13 + $0x28] sm:$0xff] %v4895_v43 }
 0x4da   :  { %6647 = shalt.err (!%p6644_p2)
}
 0x4db   :  { %s6648_s13 = scalar_lea.hbm %s6889_s6, 768 }
 0x4dc   :  { %p6649_p3 = scmp.ne.s32.totalorder %s6889_s6, %s6648_s13  ;;  %p6652_p4 = scmp.lt.u32.totalorder %s6648_s13, %s6889_s6 }
 0x4de   :  { %p6654_p5 = pnand %p6652_p4, %p6649_p3 }
 0x4e0   :  { %6657 = shalt.err (!%p6654_p5)
}
 0x4e1   :  { %4913 = dma.vmem_to_hbm [thread:$0]  %s4908_s9, 768, %s6889_s6, [#allocation6], %s6673_s4, %s6673_s4, %s6674_s8  }
 0x4e2   :  { %6664 = dma.done.wait [#allocation6], 768  }
 0x4e3   :  { %6665 = vsyncadd [#allocation6], 4294966528 }
 0x4e4   :  { %4917 = vsyncpa [#allocation5], 1 }
 0x4e5   :  { %4918 = vsyncpa [#allocation8], 1 }
 0x4e6   :  { %4919 = vsyncpa [#allocation11], 1 }
 0x4e7   :  { %4920 = vsyncpa [#allocation6], 1 }

</bundles_post_ra>
